<compile_context>
chip_gen: v7x
topology: tpu7x:2x2x1
jax: 0.10.0
libtpu: 0.0.40
codegen_flags: <defaults>
</compile_context>

<pallas_src>
import functools

import jax
import jax.numpy as jnp
from jax import lax
from jax.experimental import pallas as pl
from jax.experimental.pallas import tpu as pltpu

LANE = 128


def _pack_gate_cols(a, H, GP):
    """(..., 4H) -> (..., 4*GP): gate g occupies lanes [g*GP, g*GP+H), rest zero."""
    pad = [(0, 0)] * (a.ndim - 1) + [(0, GP - H)]
    parts = [jnp.pad(a[..., g * H:(g + 1) * H], pad) for g in range(4)]
    return jnp.concatenate(parts, axis=-1)


def fused_lstm_kernel(x_ref, wih_ref, bias_ref, whh_ref, wfc_ref, bfc_ref,
                      out_ref, *, T, B, I, GP):
    """x_ref:    (B*T, I)     raw input, batch-major rows (row = b*T + t)
       wih_ref:  (I, 4*GP)    W_ih^T, gate-packed columns (zero-padded)
       bias_ref: (1, 4*GP)    b_ih + b_hh, gate-packed
       whh_ref:  (GP, 4*GP)   W_hh^T, zero-padded rows, gate-packed columns
       wfc_ref:  (GP, LANE)   fc weight column broadcast across all 128 lanes
       bfc_ref:  (1, LANE)    fc bias broadcast across all 128 lanes
       out_ref:  (B, LANE)    fc output scalar, replicated across lanes."""

    # ---- Prologue: input projection for ALL timesteps (one shot). ----
    x2 = x_ref[...]                                            # (B*T, I)
    if I == 1:
        xp = x2 * wih_ref[...]                                 # (B*T,1)*(1,4GP)
    else:
        xp = jnp.dot(x2, wih_ref[...],
                     preferred_element_type=jnp.float32)       # (B*T, 4*GP)
    xp = xp + bias_ref[...]                                    # (B*T, 4*GP)
    xp = xp.reshape(B, T, 4 * GP)                              # (B, T, 4*GP)

    whh = whh_ref[...]                                         # (GP, 4*GP)

    h = jnp.zeros((B, GP), jnp.float32)
    c = jnp.zeros((B, GP), jnp.float32)

    # ---- Serial recurrence (fully unrolled: T is small and static). ----
    for t in range(T):
        gates = xp[:, t, :] + jnp.dot(h, whh,
                                      preferred_element_type=jnp.float32)  # (B, 4*GP)
        sg = jax.nn.sigmoid(gates)        # one packed EUP sigmoid (all gates)
        th = jnp.tanh(gates)              # one packed EUP tanh
        i_g = sg[:, 0 * GP:1 * GP]        # static lane slices (XLU)
        f_g = sg[:, 1 * GP:2 * GP]
        g_g = th[:, 2 * GP:3 * GP]
        o_g = sg[:, 3 * GP:4 * GP]
        # Padded lanes: pre-activation 0 -> i=f=o=0.5, g=0; c,h stay exactly 0.
        c = f_g * c + i_g * g_g
        h = o_g * jnp.tanh(c)

    # ---- Epilogue: Linear(H, 1), scalar replicated across 128 lanes. ----
    out = jnp.dot(h, wfc_ref[...],
                  preferred_element_type=jnp.float32) + bfc_ref[...]       # (B, LANE)
    out_ref[...] = out


def pack_params(w_ih, w_hh, b_ih, b_hh, w_fc, b_fc):
    """One-time weight packing (done outside the per-call jit)."""
    H = w_hh.shape[1]
    GP = 32 if H <= 32 else ((H + LANE - 1) // LANE) * LANE
    f32 = jnp.float32
    wih_p = _pack_gate_cols(w_ih.T.astype(f32), H, GP)                      # (I, 4*GP)
    bias_p = _pack_gate_cols((b_ih + b_hh).astype(f32)[None, :], H, GP)     # (1, 4*GP)
    whh_p = _pack_gate_cols(w_hh.T.astype(f32), H, GP)                      # (H, 4*GP)
    whh_p = jnp.pad(whh_p, ((0, GP - H), (0, 0)))                           # (GP, 4*GP)
    wfc_col = jnp.pad(w_fc.T.astype(f32), ((0, GP - H), (0, 0)))            # (GP, 1)
    wfc_p = jnp.tile(wfc_col, (1, LANE))                                    # (GP, LANE)
    bfc_p = jnp.broadcast_to(b_fc.astype(f32).reshape(1, 1), (1, LANE))     # (1, LANE)
    return wih_p, bias_p, whh_p, wfc_p, bfc_p


@jax.jit
def model_forward(x, wih_p, bias_p, whh_p, wfc_p, bfc_p):
    """x: (B, T, I) batch_first, like the PyTorch module. Returns (B,)."""
    B, T, I = x.shape
    GP = whh_p.shape[0]

    # Free reshape (batch_first is already b-major, t, i contiguous).
    x2 = x.reshape(B * T, I).astype(jnp.float32)

    kernel = functools.partial(fused_lstm_kernel, T=T, B=B, I=I, GP=GP)
    out_slab = pl.pallas_call(
        kernel,
        out_shape=jax.ShapeDtypeStruct((B, LANE), jnp.float32),
        in_specs=[pl.BlockSpec(memory_space=pltpu.MemorySpace.VMEM)] * 6,
        out_specs=pl.BlockSpec(memory_space=pltpu.MemorySpace.VMEM),
    )(x2, wih_p, bias_p, whh_p, wfc_p, bfc_p)

    return out_slab[:, 0]                      # scalar is replicated across lanes


def reference_forward(x, w_ih, w_hh, b_ih, b_hh, w_fc, b_fc):
    """Pure-JAX reference matching torch.nn.LSTM (gate order i,f,g,o) + Linear."""
    B, T, I = x.shape
    H = w_hh.shape[1]

    def step(carry, x_t):
        h, c = carry
        gates = x_t @ w_ih.T + h @ w_hh.T + b_ih + b_hh
        i_g = jax.nn.sigmoid(gates[:, 0 * H:1 * H])
        f_g = jax.nn.sigmoid(gates[:, 1 * H:2 * H])
        g_g = jnp.tanh(gates[:, 2 * H:3 * H])
        o_g = jax.nn.sigmoid(gates[:, 3 * H:4 * H])
        c_new = f_g * c + i_g * g_g
        h_new = o_g * jnp.tanh(c_new)
        return (h_new, c_new), None

    h0 = jnp.zeros((B, H), jnp.float32)
    c0 = jnp.zeros((B, H), jnp.float32)
    (hn, _), _ = lax.scan(step, (h0, c0), jnp.transpose(x, (1, 0, 2)))
    return (hn @ w_fc.T + b_fc)[:, 0]


if __name__ == "__main__":
    # Small shapes consistent with the module: input_size=1, hidden_size=30.
    B, T, I, H = 4, 8, 1, 30

    key = jax.random.PRNGKey(0)
    ks = jax.random.split(key, 8)
    k = 1.0 / jnp.sqrt(jnp.float32(H))   # PyTorch-style uniform(-1/sqrt(H), 1/sqrt(H))

    w_ih = jax.random.uniform(ks[0], (4 * H, I), jnp.float32, -k, k)
    w_hh = jax.random.uniform(ks[1], (4 * H, H), jnp.float32, -k, k)
    b_ih = jax.random.uniform(ks[2], (4 * H,), jnp.float32, -k, k)
    b_hh = jax.random.uniform(ks[3], (4 * H,), jnp.float32, -k, k)
    w_fc = jax.random.uniform(ks[4], (1, H), jnp.float32, -k, k)
    b_fc = jax.random.uniform(ks[5], (1,), jnp.float32, -k, k)

    x = jax.random.normal(ks[6], (B, T, I), jnp.float32)

    packed = pack_params(w_ih, w_hh, b_ih, b_hh, w_fc, b_fc)
    out = model_forward(x, *packed)
    out = jax.block_until_ready(out)

    ref = reference_forward(x, w_ih, w_hh, b_ih, b_hh, w_fc, b_fc)
    assert out.shape == (B,), out.shape
    assert jnp.allclose(out, ref, atol=1e-5, rtol=1e-5), (out, ref)

    print("KERNEL_OK")
</pallas_src>

<mosaic_0001>
module attributes {stable_mosaic.version = 11 : i64} {
  func.func @fused_lstm_kernel(%arg0: memref<32x1xf32, #tpu.memory_space<vmem>>, %arg1: memref<1x128xf32, #tpu.memory_space<vmem>>, %arg2: memref<1x128xf32, #tpu.memory_space<vmem>>, %arg3: memref<32x128xf32, #tpu.memory_space<vmem>>, %arg4: memref<32x128xf32, #tpu.memory_space<vmem>>, %arg5: memref<1x128xf32, #tpu.memory_space<vmem>>, %arg6: memref<4x128xf32, #tpu.memory_space<vmem>>) attributes {dimension_semantics = [], scalar_prefetch = 0 : i64, scratch_operands = 0 : i64, tpu.core_type = #tpu.core_type<tc>} {
    %c0 = arith.constant 0 : index
    %c0_0 = arith.constant 0 : index
    %0 = vector.load %arg0[%c0, %c0_0] : memref<32x1xf32, #tpu.memory_space<vmem>>, vector<32x1xf32>
    %c0_1 = arith.constant 0 : index
    %c0_2 = arith.constant 0 : index
    %1 = vector.load %arg1[%c0_1, %c0_2] : memref<1x128xf32, #tpu.memory_space<vmem>>, vector<1x128xf32>
    %2 = vector.broadcast %0 : vector<32x1xf32> to vector<32x128xf32>
    %3 = vector.broadcast %1 : vector<1x128xf32> to vector<32x128xf32>
    %4 = arith.mulf %2, %3 : vector<32x128xf32>
    %c0_3 = arith.constant 0 : index
    %c0_4 = arith.constant 0 : index
    %5 = vector.load %arg2[%c0_3, %c0_4] : memref<1x128xf32, #tpu.memory_space<vmem>>, vector<1x128xf32>
    %6 = vector.broadcast %5 : vector<1x128xf32> to vector<32x128xf32>
    %7 = arith.addf %4, %6 : vector<32x128xf32>
    %8 = vector.shape_cast %7 : vector<32x128xf32> to vector<4x8x128xf32>
    %c0_5 = arith.constant 0 : index
    %c0_6 = arith.constant 0 : index
    %9 = vector.load %arg3[%c0_5, %c0_6] : memref<32x128xf32, #tpu.memory_space<vmem>>, vector<32x128xf32>
    %cst = arith.constant 0.000000e+00 : f32
    %10 = vector.broadcast %cst : f32 to vector<4x32xf32>
    %cst_7 = arith.constant 0.000000e+00 : f32
    %11 = vector.broadcast %cst_7 : f32 to vector<4x32xf32>
    %12 = vector.extract_strided_slice %8 {offsets = [0, 0, 0], sizes = [4, 1, 128], strides = [1, 1, 1]} : vector<4x8x128xf32> to vector<4x1x128xf32>
    %13 = vector.shape_cast %12 : vector<4x1x128xf32> to vector<4x128xf32>
    %cst_8 = arith.constant dense<0.000000e+00> : vector<4x128xf32>
    %14 = tpu.matmul %10, %9, %cst_8 {dimension_numbers = #tpu.dot_dimension_numbers<[1], [0], [0], [1], [0, 0, 1, 1], [], []>} : vector<4x32xf32>, vector<32x128xf32>, vector<4x128xf32> -> vector<4x128xf32>
    %15 = arith.addf %13, %14 : vector<4x128xf32>
    %16 = arith.negf %15 : vector<4x128xf32>
    %17 = math.exp %16 : vector<4x128xf32>
    %cst_9 = arith.constant 1.000000e+00 : f32
    %18 = vector.broadcast %cst_9 : f32 to vector<4x128xf32>
    %19 = arith.addf %18, %17 : vector<4x128xf32>
    %20 = arith.divf %18, %19 : vector<4x128xf32>
    %21 = math.tanh %15 : vector<4x128xf32>
    %22 = vector.extract_strided_slice %20 {offsets = [0, 0], sizes = [4, 32], strides = [1, 1]} : vector<4x128xf32> to vector<4x32xf32>
    %23 = vector.extract_strided_slice %20 {offsets = [0, 32], sizes = [4, 32], strides = [1, 1]} : vector<4x128xf32> to vector<4x32xf32>
    %24 = vector.extract_strided_slice %21 {offsets = [0, 64], sizes = [4, 32], strides = [1, 1]} : vector<4x128xf32> to vector<4x32xf32>
    %25 = vector.extract_strided_slice %20 {offsets = [0, 96], sizes = [4, 32], strides = [1, 1]} : vector<4x128xf32> to vector<4x32xf32>
    %26 = arith.mulf %23, %11 : vector<4x32xf32>
    %27 = arith.mulf %22, %24 : vector<4x32xf32>
    %28 = arith.addf %26, %27 : vector<4x32xf32>
    %29 = math.tanh %28 : vector<4x32xf32>
    %30 = arith.mulf %25, %29 : vector<4x32xf32>
    %31 = vector.extract_strided_slice %8 {offsets = [0, 1, 0], sizes = [4, 1, 128], strides = [1, 1, 1]} : vector<4x8x128xf32> to vector<4x1x128xf32>
    %32 = vector.shape_cast %31 : vector<4x1x128xf32> to vector<4x128xf32>
    %cst_10 = arith.constant dense<0.000000e+00> : vector<4x128xf32>
    %33 = tpu.matmul %30, %9, %cst_10 {dimension_numbers = #tpu.dot_dimension_numbers<[1], [0], [0], [1], [0, 0, 1, 1], [], []>} : vector<4x32xf32>, vector<32x128xf32>, vector<4x128xf32> -> vector<4x128xf32>
    %34 = arith.addf %32, %33 : vector<4x128xf32>
    %35 = arith.negf %34 : vector<4x128xf32>
    %36 = math.exp %35 : vector<4x128xf32>
    %cst_11 = arith.constant 1.000000e+00 : f32
    %37 = vector.broadcast %cst_11 : f32 to vector<4x128xf32>
    %38 = arith.addf %37, %36 : vector<4x128xf32>
    %39 = arith.divf %37, %38 : vector<4x128xf32>
    %40 = math.tanh %34 : vector<4x128xf32>
    %41 = vector.extract_strided_slice %39 {offsets = [0, 0], sizes = [4, 32], strides = [1, 1]} : vector<4x128xf32> to vector<4x32xf32>
    %42 = vector.extract_strided_slice %39 {offsets = [0, 32], sizes = [4, 32], strides = [1, 1]} : vector<4x128xf32> to vector<4x32xf32>
    %43 = vector.extract_strided_slice %40 {offsets = [0, 64], sizes = [4, 32], strides = [1, 1]} : vector<4x128xf32> to vector<4x32xf32>
    %44 = vector.extract_strided_slice %39 {offsets = [0, 96], sizes = [4, 32], strides = [1, 1]} : vector<4x128xf32> to vector<4x32xf32>
    %45 = arith.mulf %42, %28 : vector<4x32xf32>
    %46 = arith.mulf %41, %43 : vector<4x32xf32>
    %47 = arith.addf %45, %46 : vector<4x32xf32>
    %48 = math.tanh %47 : vector<4x32xf32>
    %49 = arith.mulf %44, %48 : vector<4x32xf32>
    %50 = vector.extract_strided_slice %8 {offsets = [0, 2, 0], sizes = [4, 1, 128], strides = [1, 1, 1]} : vector<4x8x128xf32> to vector<4x1x128xf32>
    %51 = vector.shape_cast %50 : vector<4x1x128xf32> to vector<4x128xf32>
    %cst_12 = arith.constant dense<0.000000e+00> : vector<4x128xf32>
    %52 = tpu.matmul %49, %9, %cst_12 {dimension_numbers = #tpu.dot_dimension_numbers<[1], [0], [0], [1], [0, 0, 1, 1], [], []>} : vector<4x32xf32>, vector<32x128xf32>, vector<4x128xf32> -> vector<4x128xf32>
    %53 = arith.addf %51, %52 : vector<4x128xf32>
    %54 = arith.negf %53 : vector<4x128xf32>
    %55 = math.exp %54 : vector<4x128xf32>
    %cst_13 = arith.constant 1.000000e+00 : f32
    %56 = vector.broadcast %cst_13 : f32 to vector<4x128xf32>
    %57 = arith.addf %56, %55 : vector<4x128xf32>
    %58 = arith.divf %56, %57 : vector<4x128xf32>
    %59 = math.tanh %53 : vector<4x128xf32>
    %60 = vector.extract_strided_slice %58 {offsets = [0, 0], sizes = [4, 32], strides = [1, 1]} : vector<4x128xf32> to vector<4x32xf32>
    %61 = vector.extract_strided_slice %58 {offsets = [0, 32], sizes = [4, 32], strides = [1, 1]} : vector<4x128xf32> to vector<4x32xf32>
    %62 = vector.extract_strided_slice %59 {offsets = [0, 64], sizes = [4, 32], strides = [1, 1]} : vector<4x128xf32> to vector<4x32xf32>
    %63 = vector.extract_strided_slice %58 {offsets = [0, 96], sizes = [4, 32], strides = [1, 1]} : vector<4x128xf32> to vector<4x32xf32>
    %64 = arith.mulf %61, %47 : vector<4x32xf32>
    %65 = arith.mulf %60, %62 : vector<4x32xf32>
    %66 = arith.addf %64, %65 : vector<4x32xf32>
    %67 = math.tanh %66 : vector<4x32xf32>
    %68 = arith.mulf %63, %67 : vector<4x32xf32>
    %69 = vector.extract_strided_slice %8 {offsets = [0, 3, 0], sizes = [4, 1, 128], strides = [1, 1, 1]} : vector<4x8x128xf32> to vector<4x1x128xf32>
    %70 = vector.shape_cast %69 : vector<4x1x128xf32> to vector<4x128xf32>
    %cst_14 = arith.constant dense<0.000000e+00> : vector<4x128xf32>
    %71 = tpu.matmul %68, %9, %cst_14 {dimension_numbers = #tpu.dot_dimension_numbers<[1], [0], [0], [1], [0, 0, 1, 1], [], []>} : vector<4x32xf32>, vector<32x128xf32>, vector<4x128xf32> -> vector<4x128xf32>
    %72 = arith.addf %70, %71 : vector<4x128xf32>
    %73 = arith.negf %72 : vector<4x128xf32>
    %74 = math.exp %73 : vector<4x128xf32>
    %cst_15 = arith.constant 1.000000e+00 : f32
    %75 = vector.broadcast %cst_15 : f32 to vector<4x128xf32>
    %76 = arith.addf %75, %74 : vector<4x128xf32>
    %77 = arith.divf %75, %76 : vector<4x128xf32>
    %78 = math.tanh %72 : vector<4x128xf32>
    %79 = vector.extract_strided_slice %77 {offsets = [0, 0], sizes = [4, 32], strides = [1, 1]} : vector<4x128xf32> to vector<4x32xf32>
    %80 = vector.extract_strided_slice %77 {offsets = [0, 32], sizes = [4, 32], strides = [1, 1]} : vector<4x128xf32> to vector<4x32xf32>
    %81 = vector.extract_strided_slice %78 {offsets = [0, 64], sizes = [4, 32], strides = [1, 1]} : vector<4x128xf32> to vector<4x32xf32>
    %82 = vector.extract_strided_slice %77 {offsets = [0, 96], sizes = [4, 32], strides = [1, 1]} : vector<4x128xf32> to vector<4x32xf32>
    %83 = arith.mulf %80, %66 : vector<4x32xf32>
    %84 = arith.mulf %79, %81 : vector<4x32xf32>
    %85 = arith.addf %83, %84 : vector<4x32xf32>
    %86 = math.tanh %85 : vector<4x32xf32>
    %87 = arith.mulf %82, %86 : vector<4x32xf32>
    %88 = vector.extract_strided_slice %8 {offsets = [0, 4, 0], sizes = [4, 1, 128], strides = [1, 1, 1]} : vector<4x8x128xf32> to vector<4x1x128xf32>
    %89 = vector.shape_cast %88 : vector<4x1x128xf32> to vector<4x128xf32>
    %cst_16 = arith.constant dense<0.000000e+00> : vector<4x128xf32>
    %90 = tpu.matmul %87, %9, %cst_16 {dimension_numbers = #tpu.dot_dimension_numbers<[1], [0], [0], [1], [0, 0, 1, 1], [], []>} : vector<4x32xf32>, vector<32x128xf32>, vector<4x128xf32> -> vector<4x128xf32>
    %91 = arith.addf %89, %90 : vector<4x128xf32>
    %92 = arith.negf %91 : vector<4x128xf32>
    %93 = math.exp %92 : vector<4x128xf32>
    %cst_17 = arith.constant 1.000000e+00 : f32
    %94 = vector.broadcast %cst_17 : f32 to vector<4x128xf32>
    %95 = arith.addf %94, %93 : vector<4x128xf32>
    %96 = arith.divf %94, %95 : vector<4x128xf32>
    %97 = math.tanh %91 : vector<4x128xf32>
    %98 = vector.extract_strided_slice %96 {offsets = [0, 0], sizes = [4, 32], strides = [1, 1]} : vector<4x128xf32> to vector<4x32xf32>
    %99 = vector.extract_strided_slice %96 {offsets = [0, 32], sizes = [4, 32], strides = [1, 1]} : vector<4x128xf32> to vector<4x32xf32>
    %100 = vector.extract_strided_slice %97 {offsets = [0, 64], sizes = [4, 32], strides = [1, 1]} : vector<4x128xf32> to vector<4x32xf32>
    %101 = vector.extract_strided_slice %96 {offsets = [0, 96], sizes = [4, 32], strides = [1, 1]} : vector<4x128xf32> to vector<4x32xf32>
    %102 = arith.mulf %99, %85 : vector<4x32xf32>
    %103 = arith.mulf %98, %100 : vector<4x32xf32>
    %104 = arith.addf %102, %103 : vector<4x32xf32>
    %105 = math.tanh %104 : vector<4x32xf32>
    %106 = arith.mulf %101, %105 : vector<4x32xf32>
    %107 = vector.extract_strided_slice %8 {offsets = [0, 5, 0], sizes = [4, 1, 128], strides = [1, 1, 1]} : vector<4x8x128xf32> to vector<4x1x128xf32>
    %108 = vector.shape_cast %107 : vector<4x1x128xf32> to vector<4x128xf32>
    %cst_18 = arith.constant dense<0.000000e+00> : vector<4x128xf32>
    %109 = tpu.matmul %106, %9, %cst_18 {dimension_numbers = #tpu.dot_dimension_numbers<[1], [0], [0], [1], [0, 0, 1, 1], [], []>} : vector<4x32xf32>, vector<32x128xf32>, vector<4x128xf32> -> vector<4x128xf32>
    %110 = arith.addf %108, %109 : vector<4x128xf32>
    %111 = arith.negf %110 : vector<4x128xf32>
    %112 = math.exp %111 : vector<4x128xf32>
    %cst_19 = arith.constant 1.000000e+00 : f32
    %113 = vector.broadcast %cst_19 : f32 to vector<4x128xf32>
    %114 = arith.addf %113, %112 : vector<4x128xf32>
    %115 = arith.divf %113, %114 : vector<4x128xf32>
    %116 = math.tanh %110 : vector<4x128xf32>
    %117 = vector.extract_strided_slice %115 {offsets = [0, 0], sizes = [4, 32], strides = [1, 1]} : vector<4x128xf32> to vector<4x32xf32>
    %118 = vector.extract_strided_slice %115 {offsets = [0, 32], sizes = [4, 32], strides = [1, 1]} : vector<4x128xf32> to vector<4x32xf32>
    %119 = vector.extract_strided_slice %116 {offsets = [0, 64], sizes = [4, 32], strides = [1, 1]} : vector<4x128xf32> to vector<4x32xf32>
    %120 = vector.extract_strided_slice %115 {offsets = [0, 96], sizes = [4, 32], strides = [1, 1]} : vector<4x128xf32> to vector<4x32xf32>
    %121 = arith.mulf %118, %104 : vector<4x32xf32>
    %122 = arith.mulf %117, %119 : vector<4x32xf32>
    %123 = arith.addf %121, %122 : vector<4x32xf32>
    %124 = math.tanh %123 : vector<4x32xf32>
    %125 = arith.mulf %120, %124 : vector<4x32xf32>
    %126 = vector.extract_strided_slice %8 {offsets = [0, 6, 0], sizes = [4, 1, 128], strides = [1, 1, 1]} : vector<4x8x128xf32> to vector<4x1x128xf32>
    %127 = vector.shape_cast %126 : vector<4x1x128xf32> to vector<4x128xf32>
    %cst_20 = arith.constant dense<0.000000e+00> : vector<4x128xf32>
    %128 = tpu.matmul %125, %9, %cst_20 {dimension_numbers = #tpu.dot_dimension_numbers<[1], [0], [0], [1], [0, 0, 1, 1], [], []>} : vector<4x32xf32>, vector<32x128xf32>, vector<4x128xf32> -> vector<4x128xf32>
    %129 = arith.addf %127, %128 : vector<4x128xf32>
    %130 = arith.negf %129 : vector<4x128xf32>
    %131 = math.exp %130 : vector<4x128xf32>
    %cst_21 = arith.constant 1.000000e+00 : f32
    %132 = vector.broadcast %cst_21 : f32 to vector<4x128xf32>
    %133 = arith.addf %132, %131 : vector<4x128xf32>
    %134 = arith.divf %132, %133 : vector<4x128xf32>
    %135 = math.tanh %129 : vector<4x128xf32>
    %136 = vector.extract_strided_slice %134 {offsets = [0, 0], sizes = [4, 32], strides = [1, 1]} : vector<4x128xf32> to vector<4x32xf32>
    %137 = vector.extract_strided_slice %134 {offsets = [0, 32], sizes = [4, 32], strides = [1, 1]} : vector<4x128xf32> to vector<4x32xf32>
    %138 = vector.extract_strided_slice %135 {offsets = [0, 64], sizes = [4, 32], strides = [1, 1]} : vector<4x128xf32> to vector<4x32xf32>
    %139 = vector.extract_strided_slice %134 {offsets = [0, 96], sizes = [4, 32], strides = [1, 1]} : vector<4x128xf32> to vector<4x32xf32>
    %140 = arith.mulf %137, %123 : vector<4x32xf32>
    %141 = arith.mulf %136, %138 : vector<4x32xf32>
    %142 = arith.addf %140, %141 : vector<4x32xf32>
    %143 = math.tanh %142 : vector<4x32xf32>
    %144 = arith.mulf %139, %143 : vector<4x32xf32>
    %145 = vector.extract_strided_slice %8 {offsets = [0, 7, 0], sizes = [4, 1, 128], strides = [1, 1, 1]} : vector<4x8x128xf32> to vector<4x1x128xf32>
    %146 = vector.shape_cast %145 : vector<4x1x128xf32> to vector<4x128xf32>
    %cst_22 = arith.constant dense<0.000000e+00> : vector<4x128xf32>
    %147 = tpu.matmul %144, %9, %cst_22 {dimension_numbers = #tpu.dot_dimension_numbers<[1], [0], [0], [1], [0, 0, 1, 1], [], []>} : vector<4x32xf32>, vector<32x128xf32>, vector<4x128xf32> -> vector<4x128xf32>
    %148 = arith.addf %146, %147 : vector<4x128xf32>
    %149 = arith.negf %148 : vector<4x128xf32>
    %150 = math.exp %149 : vector<4x128xf32>
    %cst_23 = arith.constant 1.000000e+00 : f32
    %151 = vector.broadcast %cst_23 : f32 to vector<4x128xf32>
    %152 = arith.addf %151, %150 : vector<4x128xf32>
    %153 = arith.divf %151, %152 : vector<4x128xf32>
    %154 = math.tanh %148 : vector<4x128xf32>
    %155 = vector.extract_strided_slice %153 {offsets = [0, 0], sizes = [4, 32], strides = [1, 1]} : vector<4x128xf32> to vector<4x32xf32>
    %156 = vector.extract_strided_slice %153 {offsets = [0, 32], sizes = [4, 32], strides = [1, 1]} : vector<4x128xf32> to vector<4x32xf32>
    %157 = vector.extract_strided_slice %154 {offsets = [0, 64], sizes = [4, 32], strides = [1, 1]} : vector<4x128xf32> to vector<4x32xf32>
    %158 = vector.extract_strided_slice %153 {offsets = [0, 96], sizes = [4, 32], strides = [1, 1]} : vector<4x128xf32> to vector<4x32xf32>
    %159 = arith.mulf %156, %142 : vector<4x32xf32>
    %160 = arith.mulf %155, %157 : vector<4x32xf32>
    %161 = arith.addf %159, %160 : vector<4x32xf32>
    %162 = math.tanh %161 : vector<4x32xf32>
    %163 = arith.mulf %158, %162 : vector<4x32xf32>
    %c0_24 = arith.constant 0 : index
    %c0_25 = arith.constant 0 : index
    %164 = vector.load %arg4[%c0_24, %c0_25] : memref<32x128xf32, #tpu.memory_space<vmem>>, vector<32x128xf32>
    %cst_26 = arith.constant dense<0.000000e+00> : vector<4x128xf32>
    %165 = tpu.matmul %163, %164, %cst_26 {dimension_numbers = #tpu.dot_dimension_numbers<[1], [0], [0], [1], [0, 0, 1, 1], [], []>} : vector<4x32xf32>, vector<32x128xf32>, vector<4x128xf32> -> vector<4x128xf32>
    %c0_27 = arith.constant 0 : index
    %c0_28 = arith.constant 0 : index
    %166 = vector.load %arg5[%c0_27, %c0_28] : memref<1x128xf32, #tpu.memory_space<vmem>>, vector<1x128xf32>
    %167 = vector.broadcast %166 : vector<1x128xf32> to vector<4x128xf32>
    %168 = arith.addf %165, %167 : vector<4x128xf32>
    %c0_29 = arith.constant 0 : index
    %c0_30 = arith.constant 0 : index
    %169 = vector.load %arg6[%c0_29, %c0_30] : memref<4x128xf32, #tpu.memory_space<vmem>>, vector<4x128xf32>
    tpu.vector_store %arg6[%c0_29, %c0_30], %168 {strides = array<i32>} : memref<4x128xf32, #tpu.memory_space<vmem>>, vector<4x128xf32>,
    return
  }
}

</mosaic_0001>

<bundles_post_ra>
// kernel: model_forward.1
= control target key start
LH: loop header
LB: loop body
LE: loop exit
PB: predicated region body
PF: predicated region fallthrough
CT: control target
= control target key end

     0   :  { %11 = vsyncpa [#allocation3], 0  ;;  %s2341_s21 = smov [#allocation2]   ;;  %s2778_s0 = inlined_call_operand.vmem [shape: f32[32,1], index: 0, kind: input, shape index: {}]   ;;  %s2779_s1 = inlined_call_operand.vmem [shape: f32[1,128], index: 1, kind: input, shape index: {}]   ;;  %s2780_s2 = inlined_call_operand.vmem [shape: f32[1,128], index: 2, kind: input, shape index: {}]   ;;  %s2781_s3 = inlined_call_operand.vmem [shape: f32[32,128], index: 3, kind: input, shape index: {}]   ;;  %s2782_s4 = inlined_call_operand.hbm [shape: f32[32,128], index: 4, kind: input, shape index: {}]   ;;  %s2783_s5 = inlined_call_operand.vmem [shape: f32[1,128], index: 5, kind: input, shape index: {}]   ;;  %s2784_s6 = inlined_call_operand.vmem [shape: f32[4,128], index: 6, kind: output, shape index: {}]  }
   0x1   :  { %s25_s22 = sshll.u32 %s2341_s21, 4  ;;  %s2317_s25 = scalar_lea.hbm %s2782_s4, 512  ;;  %s26_s22 = int_to_ptr.vmem [resolvable:$true] %s25_s22 }
   0x2   :  { %p2318_p0 = scmp.ne.s32.totalorder %s2782_s4, %s2317_s25  ;;  %p2321_p1 = scmp.lt.u32.totalorder %s2317_s25, %s2782_s4 }
   0x4   :  { %p2323_p2 = pnand %p2321_p1, %p2318_p0 }
   0x6   :  { %2326 = shalt.err (!%p2323_p2)
}
   0x7   :  { %s2327_s30 = scalar_lea.vmem %s26_s22, 512  ;;  %p2332_p4 = scmp.lt.s32.totalorder %s26_s22, %s26_s22 }
   0x8   :  { %p2328_p3 = scmp.ne.s32.totalorder %s26_s22, %s2327_s30  ;;  %p2333_p5 = scmp.lt.s32.totalorder %s2327_s30, %s2327_s30 }
   0xa   :  { %p2334_p6 = por %p2333_p5, %p2332_p4 }
   0xc   :  { %p2335_p7 = pnand %p2334_p6, %p2328_p3 }
   0xe   :  { %2338 = shalt.err (!%p2335_p7)
}
   0xf   :  { %s2342_s7 = smov 128   ;;  %s2343_s8 = smov 8  }
  0x10   :  { %31 = dma.hbm_to_vmem [thread:$0]  %s2782_s4, 512, %s26_s22, [#allocation3], %s2342_s7, %s2342_s7, %s2343_s8  }
  0x11   :  { %2339 = dma.done.wait [#allocation3], 512  }
  0x12   :  { %2340 = vsyncadd [#allocation3], 4294966784  ;;  %v2344_v0 = vmov 0.0|0.0   ;;  %vm2345_vm0 = vmmov 0   ;;  %v2346_v1 = vmov 0.0   ;;  %v2347_v2 = vmov 0  }
  0x13   :  { %1996 = vmatprep.subr.bf16.mxu0 %v2344_v0  ;;  %1905 = vmatprep.mubr.msk.f32.mxu0 %vm2345_vm0, %v2346_v1  ;;  %v83_v3 = vld [vmem:[%s2781_s3] sm:$0xff]  ;;  %v84_v4 = vld [vmem:[%s2781_s3 + $0x8] sm:$0xff]  ;;  %v85_v5 = vld [vmem:[%s2781_s3 + $0x10] sm:$0xff]  ;;  %vm274_vm1 = vcmask 1041409   ;;  %vm277_vm2 = vcmask 1042434   ;;  %vm280_vm3 = vcmask 1043459  }
  0x14   :  { %2059 = vset.pattern.permute.xlu0 %v2347_v2  ;;  %2060 = vset.pattern.permute.xlu1 %v2347_v2  ;;  %v2412_v6 = vpack.c.bf16 %v84_v4, %v83_v3  ;;  %v86_v7 = vld [vmem:[%s2781_s3 + $0x18] sm:$0xff]  ;;  %v38_v8 = vld [vmem:[%s2778_s0 + $0x8] sm:$0xff]  ;;  %v37_v9 = vld [vmem:[%s2778_s0] sm:$0xff]  ;;  %vm87_vm4 = vcmask 261120  }
  0x15   :  { %2002 = vmatprep.subr.bf16.mxu1 %v2344_v0  ;;  %1916 = vmatprep.mubr.msk.f32.mxu1 %vm2345_vm0, %v2346_v1  ;;  %v2424_v10 = vpack.c.bf16 %v86_v7, %v85_v5  ;;  %v39_v11 = vld [vmem:[%s2778_s0 + $0x10] sm:$0xff]  ;;  %v40_v12 = vld [vmem:[%s2778_s0 + $0x18] sm:$0xff]  ;;  %v1809_v15 = vld [vmem:[%s2779_s1] ss:$0 sm:$0xff]  ;;  %s2348_s1 = smov 64  }
  0x16   :  { %49 = vperm.xlu0 %2059, %v38_v8   ;;  %1998 = vmatpush3.bf16.msra.mxu0 %v2412_v6  ;;  %v1810_v19 = vld [vmem:[%s2780_s2] ss:$0 sm:$0xff]  ;;  %s2349_s2 = smov 32  }
  0x17   :  { %44 = vperm.xlu1 %2060, %v37_v9   ;;  %1999 = vmatprep.subr.bf16.mxu0 %v2344_v0 }
  0x18   :  { %2004 = vmatpush3.bf16.msra.mxu1 %v2412_v6 }
  0x19   :  { %2005 = vmatprep.subr.bf16.mxu1 %v2344_v0 }
  0x1a   :  { %54 = vperm.xlu0 %2059, %v39_v11   ;;  %2001 = vmatpush3.bf16.msra.mxu0 %v2424_v10 }
  0x1b   :  { %59 = vperm.xlu1 %2060, %v40_v12   ;;  %2008 = vmatprep.subr.bf16.mxu0 %v2344_v0 }
  0x1c   :  { %2007 = vmatpush3.bf16.msra.mxu1 %v2424_v10 }
  0x1d   :  { %2014 = vmatprep.subr.bf16.mxu1 %v2344_v0  ;;  %1906 = vmatmul.mubr.f32.vlgmr.msra.gmra.mrb[0].mxu0 %v2346_v1 }
  0x1e   :  { %2010 = vmatpush3.bf16.msra.mxu0 %v2412_v6  ;;  %1927 = vmatprep.mubr.msk.f32.mxu0 %vm2345_vm0, %v2346_v1 }
  0x1f   :  { %2011 = vmatprep.subr.bf16.mxu0 %v2344_v0 }
  0x22   :  { %2013 = vmatpush3.bf16.msra.mxu0 %v2424_v10 }
  0x23   :  { %2020 = vmatprep.subr.bf16.mxu0 %v2344_v0 }
  0x95   :  { %v50_v13 = vpop.permute.xlu0 %49 }
  0x96   :  { %v45_v14 = vpop.permute.xlu1 %44  ;;  %v69_v16 = vmul.f32 %v1809_v15, %v50_v13 }
  0x97   :  { %v68_v18 = vmul.f32 %v1809_v15, %v45_v14 }
  0x98   :  { %v2452_v23 = vadd.f32 %v1810_v19, %v69_v16 }
  0x99   :  { %v55_v17 = vpop.permute.xlu0 %54  ;;  %v2454_v24 = vadd.f32 %v1810_v19, %v68_v18 }
  0x9a   :  { %v60_v20 = vpop.permute.xlu1 %59  ;;  %v70_v21 = vmul.f32 %v1809_v15, %v55_v17 }
  0x9b   :  { %v71_v27 = vmul.f32 %v1809_v15, %v60_v20 }
  0x9c   :  { %v2457_v30 = vadd.f32 %v1810_v19, %v70_v21 }
  0x9d   :  { %v2460_v32 = vadd.f32 %v1810_v19, %v71_v27 }
  0xf0   :  { %v157_v22 = vpop.f32.mrb[0].mxu0 }
  0xf1   :  { %v162_v25 = vrot.slane %v157_v22, 1  ;;  %v1907_v26 = vpop.f32.mrb[1].mxu0  ;;  %v163_v28 = vrot.slane %v157_v22, 2  ;;  %v169_v31 = vadd.f32 %v157_v22, %v2454_v24  ;;  %v164_v33 = vrot.slane %v157_v22, 3 }
  0xf3   :  { %v170_v29 = vadd.f32 %v162_v25, %v2452_v23  ;;  %v171_v34 = vadd.f32 %v163_v28, %v2457_v30  ;;  %v172_v35 = vadd.f32 %v164_v33, %v2460_v32  ;;  %v1811_v41 = vmul.f32 -1.442695, %v169_v31 }
  0xf5   :  { %2061 = vtanh.f32 %v170_v29  ;;  %v1812_v40 = vmul.f32 -1.442695, %v170_v29  ;;  %v1813_v42 = vmul.f32 -1.442695, %v171_v34  ;;  %v1814_v43 = vmul.f32 -1.442695, %v172_v35 }
  0xf6   :  { %2063 = vtanh.f32 %v169_v31 }
  0xf7   :  { %2065 = vtanh.f32 %v171_v34 }
  0xf8   :  { %2067 = vtanh.f32 %v172_v35 }
  0xf9   :  { %2069 = vpow2.f32 %v1812_v40 }
  0xfa   :  { %2071 = vpow2.f32 %v1811_v41 }
  0xfb   :  { %2073 = vpow2.f32 %v1813_v42 }
  0xfc   :  { %2075 = vpow2.f32 %v1814_v43 }
  0xff   :  { %v2062_v36 = vpop.eup %2061 }
 0x100   :  { %211 = vrot.lane.b32.xlu0 %v2062_v36, %s2348_s1  ;;  %v2064_v37 = vpop.eup %2063 }
 0x101   :  { %v2066_v38 = vpop.eup %2065 }
 0x102   :  { %213 = vrot.lane.b32.xlu1 %v2066_v38, %s2348_s1  ;;  %v2068_v39 = vpop.eup %2067 }
 0x103   :  { %v2070_v44 = vpop.eup %2069 }
 0x104   :  { %209 = vrot.lane.b32.xlu0 %v2064_v37, %s2348_s1  ;;  %v2072_v45 = vpop.eup %2071  ;;  %v186_v46 = vadd.f32 1.0, %v2070_v44 }
 0x105   :  { %v2074_v47 = vpop.eup %2073  ;;  %v185_v48 = vadd.f32 1.0, %v2072_v45 }
 0x106   :  { %215 = vrot.lane.b32.xlu1 %v2068_v39, %s2348_s1  ;;  %v187_v49 = vadd.f32 1.0, %v2074_v47  ;;  %2077 = vrcp.f32 %v186_v46  ;;  %v2076_v50 = vpop.eup %2075 }
 0x107   :  { %2079 = vrcp.f32 %v185_v48  ;;  %v188_v51 = vadd.f32 1.0, %v2076_v50 }
 0x108   :  { %2081 = vrcp.f32 %v187_v49 }
 0x109   :  { %2083 = vrcp.f32 %v188_v51 }
 0x110   :  { %v2078_v52 = vpop.eup %2077 }
 0x111   :  { %v2080_v55 = vpop.eup %2079  ;;  %v202_v2 = vmul.f32 0.0, %v2078_v52 }
 0x112   :  { %v2082_v56 = vpop.eup %2081  ;;  %v201_v7 = vmul.f32 0.0, %v2080_v55 }
 0x113   :  { %v2084_v61 = vpop.eup %2083  ;;  %v203_v5 = vmul.f32 0.0, %v2082_v56 }
 0x114   :  { %v204_v13 = vmul.f32 0.0, %v2084_v61 }
 0x172   :  { %v212_v53 = vpop.permute.xlu0 %211 }
 0x173   :  { %v222_v54 = vmul.f32 %v2078_v52, %v212_v53 }
 0x174   :  { %v214_v57 = vpop.permute.xlu1 %213 }
 0x175   :  { %231 = vrot.lane.b32.xlu0 %v222_v54, %s2349_s2  ;;  %v223_v59 = vmul.f32 %v2082_v56, %v214_v57 }
 0x176   :  { %v210_v58 = vpop.permute.xlu0 %209 }
 0x177   :  { %v221_v60 = vmul.f32 %v2080_v55, %v210_v58  ;;  %233 = vrot.lane.b32.xlu1 %v223_v59, %s2349_s2 }
 0x178   :  { %v216_v62 = vpop.permute.xlu1 %215 }
 0x179   :  { %229 = vrot.lane.b32.xlu0 %v221_v60, %s2349_s2  ;;  %v224_v63 = vmul.f32 %v2084_v61, %v216_v62 }
 0x17b   :  { %235 = vrot.lane.b32.xlu1 %v224_v63, %s2349_s2 }
 0x1e7   :  { %v232_v3 = vpop.permute.xlu0 %231 }
 0x1e8   :  { %v2472_v4 = vadd.f32 %v232_v3, %v202_v2 }
 0x1e9   :  { %v234_v8 = vpop.permute.xlu1 %233 }
 0x1ea   :  { %2085 = vtanh.f32 %v2472_v4  ;;  %v2475_v11 = vadd.f32 %v234_v8, %v203_v5 }
 0x1eb   :  { %v230_v9 = vpop.permute.xlu0 %229 }
 0x1ec   :  { %v2477_v12 = vadd.f32 %v230_v9, %v201_v7  ;;  %2087 = vtanh.f32 %v2475_v11 }
 0x1ed   :  { %v236_v14 = vpop.permute.xlu1 %235 }
 0x1ee   :  { %2089 = vtanh.f32 %v2477_v12  ;;  %v2481_v15 = vadd.f32 %v236_v14, %v204_v13 }
 0x1f0   :  { %2091 = vtanh.f32 %v2481_v15 }
 0x1f4   :  { %v2086_v16 = vpop.eup %2085 }
 0x1f5   :  { %255 = vrot.lane.b32.xlu0 %v2086_v16, %s2348_s1 }
 0x1f6   :  { %v2088_v17 = vpop.eup %2087 }
 0x1f7   :  { %257 = vrot.lane.b32.xlu1 %v2088_v17, %s2348_s1 }
 0x1f8   :  { %v2090_v18 = vpop.eup %2089 }
 0x1f9   :  { %253 = vrot.lane.b32.xlu0 %v2090_v18, %s2348_s1 }
 0x1fa   :  { %v2092_v19 = vpop.eup %2091 }
 0x1fb   :  { %259 = vrot.lane.b32.xlu1 %v2092_v19, %s2348_s1 }
 0x267   :  { %v256_v20 = vpop.permute.xlu0 %255 }
 0x268   :  { %v266_v21 = vmul.f32 %v2078_v52, %v256_v20  ;;  %v400_v20 = vrot.slane %v2477_v12, 7 }
 0x269   :  { %v258_v22 = vpop.permute.xlu1 %257 }
 0x26a   :  { %v267_v25 = vmul.f32 %v2082_v56, %v258_v22  ;;  %v273_v27 = vrot.slane %v266_v21, 7 }
 0x26b   :  { %v254_v26 = vpop.permute.xlu0 %253 }
 0x26c   :  { %v265_v28 = vmul.f32 %v2080_v55, %v254_v26  ;;  %v276_v29 = vrot.slane %v267_v25, 6  ;;  %v401_v25 = vrot.slane %v2472_v4, 7  ;;  %v402_v26 = vrot.slane %v2475_v11, 7 }
 0x26d   :  { %v260_v33 = vpop.permute.xlu1 %259 }
 0x26e   :  { %v275_v31 = vsel %vm274_vm1, %v273_v27, %v265_v28  ;;  %v268_v34 = vmul.f32 %v2084_v61, %v260_v33 }
 0x26f   :  { %v278_v35 = vsel %vm277_vm2, %v276_v29, %v275_v31 }
 0x270   :  { %v279_v36 = vrot.slane %v268_v34, 5  ;;  %v403_v34 = vrot.slane %v2481_v15, 7 }
 0x272   :  { %v281_v37 = vsel %vm280_vm3, %v279_v36, %v278_v35 }
 0x273   :  { %282 = vrot.lane.b32.xlu0 %v281_v37, %s2349_s2 }
 0x2e5   :  { %v283_v38 = vpop.permute.xlu0 %282 }
 0x2e6   :  { %1917 = vmatmul.mubr.msk.f32.vlgmr.msra.gmra.mrb[0].mxu1 %vm87_vm4, %v283_v38 }
 0x2e7   :  { %2016 = vmatpush3.bf16.msra.mxu1 %v2412_v6  ;;  %1938 = vmatprep.mubr.msk.f32.mxu1 %vm2345_vm0, %v2346_v1 }
 0x2e8   :  { %2017 = vmatprep.subr.bf16.mxu1 %v2344_v0 }
 0x2eb   :  { %2019 = vmatpush3.bf16.msra.mxu1 %v2424_v10 }
 0x2ec   :  { %2026 = vmatprep.subr.bf16.mxu1 %v2344_v0 }
 0x3b9   :  { %v352_v39 = vpop.f32.mrb[0].mxu1 }
 0x3ba   :  { %v357_v40 = vrot.slane %v352_v39, 7  ;;  %v1918_v41 = vpop.f32.mrb[1].mxu1  ;;  %v358_v42 = vrot.slane %v352_v39, 1  ;;  %v365_v44 = vadd.f32 %v352_v39, %v2452_v23  ;;  %v359_v45 = vrot.slane %v352_v39, 2 }
 0x3bc   :  { %v364_v43 = vadd.f32 %v357_v40, %v2454_v24  ;;  %v366_v46 = vadd.f32 %v358_v42, %v2457_v30  ;;  %v367_v47 = vadd.f32 %v359_v45, %v2460_v32  ;;  %v1817_v53 = vmul.f32 -1.442695, %v365_v44 }
 0x3be   :  { %2093 = vtanh.f32 %v364_v43  ;;  %v1816_v52 = vmul.f32 -1.442695, %v364_v43  ;;  %v1818_v54 = vmul.f32 -1.442695, %v366_v46  ;;  %v1819_v55 = vmul.f32 -1.442695, %v367_v47 }
 0x3bf   :  { %2095 = vtanh.f32 %v365_v44 }
 0x3c0   :  { %2097 = vtanh.f32 %v366_v46 }
 0x3c1   :  { %2099 = vtanh.f32 %v367_v47 }
 0x3c2   :  { %2101 = vpow2.f32 %v1816_v52 }
 0x3c3   :  { %2103 = vpow2.f32 %v1817_v53 }
 0x3c4   :  { %2105 = vpow2.f32 %v1818_v54 }
 0x3c5   :  { %2107 = vpow2.f32 %v1819_v55 }
 0x3c8   :  { %v2094_v48 = vpop.eup %2093 }
 0x3c9   :  { %416 = vrot.lane.b32.xlu1 %v2094_v48, %s2348_s1  ;;  %v2096_v49 = vpop.eup %2095 }
 0x3ca   :  { %v2098_v50 = vpop.eup %2097 }
 0x3cb   :  { %420 = vrot.lane.b32.xlu0 %v2098_v50, %s2348_s1  ;;  %v2100_v51 = vpop.eup %2099 }
 0x3cc   :  { %v2102_v56 = vpop.eup %2101 }
 0x3cd   :  { %418 = vrot.lane.b32.xlu1 %v2096_v49, %s2348_s1  ;;  %v2104_v57 = vpop.eup %2103  ;;  %v380_v58 = vadd.f32 1.0, %v2102_v56 }
 0x3ce   :  { %v2106_v59 = vpop.eup %2105  ;;  %v381_v60 = vadd.f32 1.0, %v2104_v57 }
 0x3cf   :  { %422 = vrot.lane.b32.xlu0 %v2100_v51, %s2348_s1  ;;  %v382_v61 = vadd.f32 1.0, %v2106_v59  ;;  %2109 = vrcp.f32 %v380_v58  ;;  %v2108_v62 = vpop.eup %2107 }
 0x3d0   :  { %2111 = vrcp.f32 %v381_v60  ;;  %v383_v63 = vadd.f32 1.0, %v2108_v62 }
 0x3d1   :  { %2113 = vrcp.f32 %v382_v61 }
 0x3d2   :  { %2115 = vrcp.f32 %v383_v63 }
 0x3d9   :  { %v2110_v2 = vpop.eup %2109 }
 0x3da   :  { %v2112_v7 = vpop.eup %2111  ;;  %v408_v21 = vmul.f32 %v2110_v2, %v400_v20 }
 0x3db   :  { %v2114_v8 = vpop.eup %2113  ;;  %v409_v29 = vmul.f32 %v2112_v7, %v401_v25 }
 0x3dc   :  { %v2116_v17 = vpop.eup %2115  ;;  %v410_v28 = vmul.f32 %v2114_v8, %v402_v26 }
 0x3dd   :  { %v411_v12 = vmul.f32 %v2116_v17, %v403_v34 }
 0x43b   :  { %v417_v3 = vpop.permute.xlu1 %416 }
 0x43c   :  { %v428_v5 = vmul.f32 %v2110_v2, %v417_v3 }
 0x43d   :  { %v421_v9 = vpop.permute.xlu0 %420 }
 0x43e   :  { %436 = vrot.lane.b32.xlu1 %v428_v5, %s2349_s2  ;;  %v430_v14 = vmul.f32 %v2114_v8, %v421_v9 }
 0x43f   :  { %v419_v13 = vpop.permute.xlu1 %418 }
 0x440   :  { %v429_v16 = vmul.f32 %v2112_v7, %v419_v13  ;;  %440 = vrot.lane.b32.xlu0 %v430_v14, %s2349_s2 }
 0x441   :  { %v423_v18 = vpop.permute.xlu0 %422 }
 0x442   :  { %438 = vrot.lane.b32.xlu1 %v429_v16, %s2349_s2  ;;  %v431_v19 = vmul.f32 %v2116_v17, %v423_v18 }
 0x444   :  { %442 = vrot.lane.b32.xlu0 %v431_v19, %s2349_s2 }
 0x4b0   :  { %v437_v22 = vpop.permute.xlu1 %436 }
 0x4b1   :  { %v2514_v27 = vadd.f32 %v437_v22, %v408_v21 }
 0x4b2   :  { %v441_v31 = vpop.permute.xlu0 %440 }
 0x4b3   :  { %2117 = vtanh.f32 %v2514_v27  ;;  %v2518_v35 = vadd.f32 %v441_v31, %v410_v28 }
 0x4b4   :  { %v439_v33 = vpop.permute.xlu1 %438 }
 0x4b5   :  { %v2520_v36 = vadd.f32 %v439_v33, %v409_v29  ;;  %2119 = vtanh.f32 %v2518_v35 }
 0x4b6   :  { %v443_v4 = vpop.permute.xlu0 %442 }
 0x4b7   :  { %2121 = vtanh.f32 %v2520_v36  ;;  %v2524_v11 = vadd.f32 %v443_v4, %v411_v12 }
 0x4b9   :  { %2123 = vtanh.f32 %v2524_v11 }
 0x4bd   :  { %v2118_v37 = vpop.eup %2117 }
 0x4be   :  { %460 = vrot.lane.b32.xlu1 %v2118_v37, %s2348_s1 }
 0x4bf   :  { %v2120_v38 = vpop.eup %2119 }
 0x4c0   :  { %464 = vrot.lane.b32.xlu0 %v2120_v38, %s2348_s1 }
 0x4c1   :  { %v2122_v39 = vpop.eup %2121 }
 0x4c2   :  { %462 = vrot.lane.b32.xlu1 %v2122_v39, %s2348_s1 }
 0x4c3   :  { %v2124_v15 = vpop.eup %2123 }
 0x4c4   :  { %466 = vrot.lane.b32.xlu0 %v2124_v15, %s2348_s1 }
 0x530   :  { %v461_v40 = vpop.permute.xlu1 %460 }
 0x531   :  { %v472_v41 = vmul.f32 %v2110_v2, %v461_v40  ;;  %v604_v40 = vrot.slane %v2514_v27, 7 }
 0x532   :  { %v465_v42 = vpop.permute.xlu0 %464 }
 0x533   :  { %v474_v43 = vmul.f32 %v2114_v8, %v465_v42  ;;  %v480_v45 = vrot.slane %v472_v41, 1 }
 0x534   :  { %v463_v44 = vpop.permute.xlu1 %462 }
 0x535   :  { %v473_v46 = vmul.f32 %v2112_v7, %v463_v44  ;;  %v482_v47 = vrot.slane %v474_v43, 7  ;;  %v605_v43 = vrot.slane %v2520_v36, 7 }
 0x536   :  { %v467_v48 = vpop.permute.xlu0 %466 }
 0x537   :  { %v481_v49 = vsel %vm274_vm1, %v473_v46, %v480_v45  ;;  %v475_v50 = vmul.f32 %v2116_v17, %v467_v48  ;;  %v607_v45 = vrot.slane %v2524_v11, 7 }
 0x538   :  { %v483_v51 = vsel %vm277_vm2, %v482_v47, %v481_v49  ;;  %v606_v49 = vrot.slane %v2518_v35, 7 }
 0x539   :  { %v484_v52 = vrot.slane %v475_v50, 6 }
 0x53b   :  { %v485_v53 = vsel %vm280_vm3, %v484_v52, %v483_v51 }
 0x53c   :  { %486 = vrot.lane.b32.xlu1 %v485_v53, %s2349_s2 }
 0x5ae   :  { %v487_v54 = vpop.permute.xlu1 %486 }
 0x5af   :  { %1928 = vmatmul.mubr.msk.f32.vlgmr.msra.gmra.mrb[2].mxu0 %vm87_vm4, %v487_v54 }
 0x5b0   :  { %2022 = vmatpush3.bf16.msra.mxu0 %v2412_v6  ;;  %1949 = vmatprep.mubr.msk.f32.mxu0 %vm2345_vm0, %v2346_v1 }
 0x5b1   :  { %2023 = vmatprep.subr.bf16.mxu0 %v2344_v0 }
 0x5b4   :  { %2025 = vmatpush3.bf16.msra.mxu0 %v2424_v10 }
 0x5b5   :  { %2032 = vmatprep.subr.bf16.mxu0 %v2344_v0 }
 0x682   :  { %v556_v55 = vpop.f32.mrb[2].mxu0 }
 0x683   :  { %v561_v56 = vrot.slane %v556_v55, 6  ;;  %v1929_v57 = vpop.f32.mrb[3].mxu0  ;;  %v562_v58 = vrot.slane %v556_v55, 7  ;;  %v563_v59 = vrot.slane %v556_v55, 1  ;;  %v570_v63 = vadd.f32 %v556_v55, %v2457_v30 }
 0x685   :  { %v568_v60 = vadd.f32 %v561_v56, %v2454_v24  ;;  %v569_v61 = vadd.f32 %v562_v58, %v2452_v23  ;;  %v571_v62 = vadd.f32 %v563_v59, %v2460_v32  ;;  %v1823_v14 = vmul.f32 -1.442695, %v570_v63 }
 0x687   :  { %2125 = vtanh.f32 %v568_v60  ;;  %v1821_v8 = vmul.f32 -1.442695, %v568_v60  ;;  %v1822_v9 = vmul.f32 -1.442695, %v569_v61  ;;  %v1824_v13 = vmul.f32 -1.442695, %v571_v62 }
 0x688   :  { %2127 = vtanh.f32 %v569_v61 }
 0x689   :  { %2129 = vtanh.f32 %v571_v62 }
 0x68a   :  { %2131 = vtanh.f32 %v570_v63 }
 0x68b   :  { %2133 = vpow2.f32 %v1821_v8 }
 0x68c   :  { %2135 = vpow2.f32 %v1822_v9 }
 0x68d   :  { %2137 = vpow2.f32 %v1824_v13 }
 0x68e   :  { %2139 = vpow2.f32 %v1823_v14 }
 0x691   :  { %v2126_v2 = vpop.eup %2125 }
 0x692   :  { %620 = vrot.lane.b32.xlu0 %v2126_v2, %s2348_s1  ;;  %v2128_v3 = vpop.eup %2127 }
 0x693   :  { %v2130_v5 = vpop.eup %2129  ;;  %622 = vrot.lane.b32.xlu1 %v2128_v3, %s2348_s1 }
 0x694   :  { %v2132_v7 = vpop.eup %2131 }
 0x695   :  { %v2134_v16 = vpop.eup %2133 }
 0x696   :  { %626 = vrot.lane.b32.xlu0 %v2130_v5, %s2348_s1  ;;  %v584_v17 = vadd.f32 1.0, %v2134_v16  ;;  %v2136_v18 = vpop.eup %2135 }
 0x697   :  { %624 = vrot.lane.b32.xlu1 %v2132_v7, %s2348_s1  ;;  %v2138_v19 = vpop.eup %2137  ;;  %v585_v20 = vadd.f32 1.0, %v2136_v18 }
 0x698   :  { %2141 = vrcp.f32 %v584_v17  ;;  %v2140_v21 = vpop.eup %2139  ;;  %v587_v22 = vadd.f32 1.0, %v2138_v19 }
 0x699   :  { %v586_v25 = vadd.f32 1.0, %v2140_v21  ;;  %2143 = vrcp.f32 %v585_v20 }
 0x69a   :  { %2145 = vrcp.f32 %v587_v22 }
 0x69b   :  { %2147 = vrcp.f32 %v586_v25 }
 0x6a2   :  { %v2142_v26 = vpop.eup %2141 }
 0x6a3   :  { %v2144_v31 = vpop.eup %2143  ;;  %v612_v41 = vmul.f32 %v2142_v26, %v604_v40 }
 0x6a4   :  { %v2146_v34 = vpop.eup %2145  ;;  %v613_v46 = vmul.f32 %v2144_v31, %v605_v43 }
 0x6a5   :  { %v2148_v38 = vpop.eup %2147  ;;  %v615_v48 = vmul.f32 %v2146_v34, %v607_v45 }
 0x6a6   :  { %v614_v27 = vmul.f32 %v2148_v38, %v606_v49 }
 0x704   :  { %v621_v28 = vpop.permute.xlu0 %620 }
 0x705   :  { %v632_v29 = vmul.f32 %v2142_v26, %v621_v28  ;;  %v623_v33 = vpop.permute.xlu1 %622 }
 0x706   :  { %v633_v12 = vmul.f32 %v2144_v31, %v623_v33 }
 0x707   :  { %640 = vrot.lane.b32.xlu0 %v632_v29, %s2349_s2 }
 0x708   :  { %v627_v4 = vpop.permute.xlu0 %626  ;;  %642 = vrot.lane.b32.xlu1 %v633_v12, %s2349_s2 }
 0x709   :  { %v635_v37 = vmul.f32 %v2146_v34, %v627_v4  ;;  %v625_v39 = vpop.permute.xlu1 %624 }
 0x70a   :  { %v634_v15 = vmul.f32 %v2148_v38, %v625_v39 }
 0x70b   :  { %646 = vrot.lane.b32.xlu0 %v635_v37, %s2349_s2 }
 0x70c   :  { %644 = vrot.lane.b32.xlu1 %v634_v15, %s2349_s2 }
 0x779   :  { %v641_v42 = vpop.permute.xlu0 %640 }
 0x77a   :  { %v2556_v44 = vadd.f32 %v641_v42, %v612_v41  ;;  %v643_v47 = vpop.permute.xlu1 %642 }
 0x77b   :  { %v2561_v50 = vadd.f32 %v643_v47, %v613_v46 }
 0x77c   :  { %2149 = vtanh.f32 %v2556_v44 }
 0x77d   :  { %v647_v51 = vpop.permute.xlu0 %646  ;;  %2151 = vtanh.f32 %v2561_v50 }
 0x77e   :  { %v2563_v52 = vadd.f32 %v647_v51, %v615_v48  ;;  %v645_v36 = vpop.permute.xlu1 %644 }
 0x77f   :  { %v2567_v53 = vadd.f32 %v645_v36, %v614_v27 }
 0x780   :  { %2153 = vtanh.f32 %v2563_v52 }
 0x781   :  { %2155 = vtanh.f32 %v2567_v53 }
 0x786   :  { %v2150_v11 = vpop.eup %2149 }
 0x787   :  { %664 = vrot.lane.b32.xlu0 %v2150_v11, %s2348_s1  ;;  %v2152_v54 = vpop.eup %2151 }
 0x788   :  { %666 = vrot.lane.b32.xlu1 %v2152_v54, %s2348_s1 }
 0x78a   :  { %v2154_v35 = vpop.eup %2153 }
 0x78b   :  { %670 = vrot.lane.b32.xlu0 %v2154_v35, %s2348_s1  ;;  %v2156_v55 = vpop.eup %2155 }
 0x78c   :  { %668 = vrot.lane.b32.xlu1 %v2156_v55, %s2348_s1 }
 0x7f9   :  { %v665_v56 = vpop.permute.xlu0 %664 }
 0x7fa   :  { %v676_v57 = vmul.f32 %v2142_v26, %v665_v56  ;;  %v667_v58 = vpop.permute.xlu1 %666  ;;  %v808_v56 = vrot.slane %v2556_v44, 7 }
 0x7fb   :  { %v677_v59 = vmul.f32 %v2144_v31, %v667_v58 }
 0x7fc   :  { %v684_v60 = vrot.slane %v676_v57, 2 }
 0x7fd   :  { %v671_v61 = vpop.permute.xlu0 %670  ;;  %v685_v63 = vrot.slane %v677_v59, 1  ;;  %v809_v59 = vrot.slane %v2561_v50, 7 }
 0x7fe   :  { %v679_v62 = vmul.f32 %v2146_v34, %v671_v61  ;;  %v669_v2 = vpop.permute.xlu1 %668  ;;  %v810_v61 = vrot.slane %v2567_v53, 7 }
 0x7ff   :  { %v686_v5 = vsel %vm274_vm1, %v685_v63, %v684_v60  ;;  %v678_v7 = vmul.f32 %v2148_v38, %v669_v2 }
 0x800   :  { %v688_v3 = vrot.slane %v679_v62, 7 }
 0x801   :  { %v687_v8 = vsel %vm277_vm2, %v678_v7, %v686_v5 }
 0x802   :  { %v689_v9 = vsel %vm280_vm3, %v688_v3, %v687_v8  ;;  %v811_v3 = vrot.slane %v2563_v52, 7 }
 0x803   :  { %690 = vrot.lane.b32.xlu0 %v689_v9, %s2349_s2 }
 0x875   :  { %v691_v13 = vpop.permute.xlu0 %690 }
 0x876   :  { %1939 = vmatmul.mubr.msk.f32.vlgmr.msra.gmra.mrb[2].mxu1 %vm87_vm4, %v691_v13 }
 0x877   :  { %2028 = vmatpush3.bf16.msra.mxu1 %v2412_v6  ;;  %1960 = vmatprep.mubr.msk.f32.mxu1 %vm2345_vm0, %v2346_v1 }
 0x878   :  { %2029 = vmatprep.subr.bf16.mxu1 %v2344_v0 }
 0x87b   :  { %2031 = vmatpush3.bf16.msra.mxu1 %v2424_v10 }
 0x87c   :  { %2038 = vmatprep.subr.bf16.mxu1 %v2344_v0 }
 0x949   :  { %v760_v14 = vpop.f32.mrb[2].mxu1 }
 0x94a   :  { %v765_v16 = vrot.slane %v760_v14, 5  ;;  %v1940_v17 = vpop.f32.mrb[3].mxu1  ;;  %v766_v18 = vrot.slane %v760_v14, 6  ;;  %v767_v19 = vrot.slane %v760_v14, 7  ;;  %v775_v25 = vadd.f32 %v760_v14, %v2460_v32 }
 0x94c   :  { %v772_v20 = vadd.f32 %v765_v16, %v2454_v24  ;;  %v773_v21 = vadd.f32 %v766_v18, %v2452_v23  ;;  %v774_v22 = vadd.f32 %v767_v19, %v2457_v30  ;;  %v1829_v4 = vmul.f32 -1.442695, %v775_v25 }
 0x94e   :  { %2157 = vtanh.f32 %v772_v20  ;;  %v1826_v33 = vmul.f32 -1.442695, %v772_v20  ;;  %v1827_v34 = vmul.f32 -1.442695, %v773_v21  ;;  %v1828_v12 = vmul.f32 -1.442695, %v774_v22 }
 0x94f   :  { %2159 = vtanh.f32 %v773_v21 }
 0x950   :  { %2161 = vtanh.f32 %v774_v22 }
 0x951   :  { %2163 = vtanh.f32 %v775_v25 }
 0x952   :  { %2165 = vpow2.f32 %v1826_v33 }
 0x953   :  { %2167 = vpow2.f32 %v1827_v34 }
 0x954   :  { %2169 = vpow2.f32 %v1828_v12 }
 0x955   :  { %2171 = vpow2.f32 %v1829_v4 }
 0x958   :  { %v2158_v26 = vpop.eup %2157 }
 0x959   :  { %824 = vrot.lane.b32.xlu1 %v2158_v26, %s2348_s1  ;;  %v2160_v28 = vpop.eup %2159 }
 0x95a   :  { %v2162_v29 = vpop.eup %2161  ;;  %826 = vrot.lane.b32.xlu0 %v2160_v28, %s2348_s1 }
 0x95b   :  { %v2164_v31 = vpop.eup %2163 }
 0x95c   :  { %v2166_v37 = vpop.eup %2165 }
 0x95d   :  { %828 = vrot.lane.b32.xlu1 %v2162_v29, %s2348_s1  ;;  %v788_v38 = vadd.f32 1.0, %v2166_v37  ;;  %v2168_v39 = vpop.eup %2167 }
 0x95e   :  { %830 = vrot.lane.b32.xlu0 %v2164_v31, %s2348_s1  ;;  %v2170_v15 = vpop.eup %2169  ;;  %v789_v40 = vadd.f32 1.0, %v2168_v39 }
 0x95f   :  { %2173 = vrcp.f32 %v788_v38  ;;  %v2172_v41 = vpop.eup %2171  ;;  %v790_v42 = vadd.f32 1.0, %v2170_v15 }
 0x960   :  { %v791_v43 = vadd.f32 1.0, %v2172_v41  ;;  %2175 = vrcp.f32 %v789_v40 }
 0x961   :  { %2177 = vrcp.f32 %v790_v42 }
 0x962   :  { %2179 = vrcp.f32 %v791_v43 }
 0x969   :  { %v2174_v45 = vpop.eup %2173 }
 0x96a   :  { %v2176_v48 = vpop.eup %2175  ;;  %v816_v57 = vmul.f32 %v2174_v45, %v808_v56 }
 0x96b   :  { %v2178_v51 = vpop.eup %2177  ;;  %v817_v62 = vmul.f32 %v2176_v48, %v809_v59 }
 0x96c   :  { %v2180_v54 = vpop.eup %2179  ;;  %v818_v2 = vmul.f32 %v2178_v51, %v810_v61 }
 0x96d   :  { %v819_v44 = vmul.f32 %v2180_v54, %v811_v3 }
 0x9cb   :  { %v825_v46 = vpop.permute.xlu1 %824 }
 0x9cc   :  { %v836_v47 = vmul.f32 %v2174_v45, %v825_v46  ;;  %v827_v49 = vpop.permute.xlu0 %826 }
 0x9cd   :  { %v837_v27 = vmul.f32 %v2176_v48, %v827_v49 }
 0x9ce   :  { %844 = vrot.lane.b32.xlu1 %v836_v47, %s2349_s2 }
 0x9cf   :  { %v829_v36 = vpop.permute.xlu1 %828  ;;  %846 = vrot.lane.b32.xlu0 %v837_v27, %s2349_s2 }
 0x9d0   :  { %v838_v11 = vmul.f32 %v2178_v51, %v829_v36  ;;  %v831_v35 = vpop.permute.xlu0 %830 }
 0x9d1   :  { %v839_v55 = vmul.f32 %v2180_v54, %v831_v35 }
 0x9d2   :  { %848 = vrot.lane.b32.xlu1 %v838_v11, %s2349_s2 }
 0x9d3   :  { %850 = vrot.lane.b32.xlu0 %v839_v55, %s2349_s2 }
 0xa40   :  { %v845_v58 = vpop.permute.xlu1 %844 }
 0xa41   :  { %v2599_v60 = vadd.f32 %v845_v58, %v816_v57  ;;  %v847_v63 = vpop.permute.xlu0 %846 }
 0xa42   :  { %v2604_v5 = vadd.f32 %v847_v63, %v817_v62 }
 0xa43   :  { %2181 = vtanh.f32 %v2599_v60 }
 0xa44   :  { %v849_v7 = vpop.permute.xlu1 %848  ;;  %2183 = vtanh.f32 %v2604_v5 }
 0xa45   :  { %v2606_v8 = vadd.f32 %v849_v7, %v818_v2  ;;  %v851_v50 = vpop.permute.xlu0 %850 }
 0xa46   :  { %v2610_v9 = vadd.f32 %v851_v50, %v819_v44 }
 0xa47   :  { %2185 = vtanh.f32 %v2606_v8 }
 0xa48   :  { %2187 = vtanh.f32 %v2610_v9 }
 0xa4d   :  { %v2182_v53 = vpop.eup %2181 }
 0xa4e   :  { %868 = vrot.lane.b32.xlu1 %v2182_v53, %s2348_s1  ;;  %v2184_v13 = vpop.eup %2183 }
 0xa4f   :  { %870 = vrot.lane.b32.xlu0 %v2184_v13, %s2348_s1 }
 0xa51   :  { %v2186_v52 = vpop.eup %2185 }
 0xa52   :  { %872 = vrot.lane.b32.xlu1 %v2186_v52, %s2348_s1  ;;  %v2188_v14 = vpop.eup %2187 }
 0xa53   :  { %874 = vrot.lane.b32.xlu0 %v2188_v14, %s2348_s1 }
 0xac0   :  { %v869_v16 = vpop.permute.xlu1 %868 }
 0xac1   :  { %v880_v17 = vmul.f32 %v2174_v45, %v869_v16  ;;  %v871_v18 = vpop.permute.xlu0 %870 }
 0xac2   :  { %v881_v19 = vmul.f32 %v2176_v48, %v871_v18  ;;  %v1014_v18 = vrot.slane %v2604_v5, 7 }
 0xac3   :  { %v888_v20 = vrot.slane %v880_v17, 3  ;;  %v1013_v17 = vrot.slane %v2599_v60, 7 }
 0xac4   :  { %v873_v21 = vpop.permute.xlu1 %872  ;;  %v889_v25 = vrot.slane %v881_v19, 2 }
 0xac5   :  { %v882_v22 = vmul.f32 %v2178_v51, %v873_v21  ;;  %v875_v26 = vpop.permute.xlu0 %874 }
 0xac6   :  { %v890_v29 = vsel %vm274_vm1, %v889_v25, %v888_v20  ;;  %v883_v31 = vmul.f32 %v2180_v54, %v875_v26 }
 0xac7   :  { %v891_v28 = vrot.slane %v882_v22, 1 }
 0xac9   :  { %v892_v33 = vsel %vm277_vm2, %v891_v28, %v890_v29  ;;  %v1015_v28 = vrot.slane %v2606_v8, 7  ;;  %v1016_v29 = vrot.slane %v2610_v9, 7 }
 0xaca   :  { %v893_v34 = vsel %vm280_vm3, %v883_v31, %v892_v33 }
 0xacb   :  { %894 = vrot.lane.b32.xlu1 %v893_v34, %s2349_s2 }
 0xb3d   :  { %v895_v12 = vpop.permute.xlu1 %894 }
 0xb3e   :  { %1950 = vmatmul.mubr.msk.f32.vlgmr.msra.gmra.mrb[4].mxu0 %vm87_vm4, %v895_v12 }
 0xb3f   :  { %2034 = vmatpush3.bf16.msra.mxu0 %v2412_v6  ;;  %1971 = vmatprep.mubr.msk.f32.mxu0 %vm2345_vm0, %v2346_v1 }
 0xb40   :  { %2035 = vmatprep.subr.bf16.mxu0 %v2344_v0 }
 0xb43   :  { %2037 = vmatpush3.bf16.msra.mxu0 %v2424_v10 }
 0xb44   :  { %2044 = vmatprep.subr.bf16.mxu0 %v2344_v0 }
 0xc11   :  { %v964_v4 = vpop.f32.mrb[4].mxu0 }
 0xc12   :  { %v969_v37 = vrot.slane %v964_v4, 4  ;;  %v970_v38 = vrot.slane %v964_v4, 5  ;;  %v1951_v39 = vpop.f32.mrb[5].mxu0  ;;  %v971_v15 = vrot.slane %v964_v4, 6  ;;  %v972_v42 = vrot.slane %v964_v4, 7 }
 0xc14   :  { %v977_v40 = vadd.f32 %v969_v37, %v2454_v24  ;;  %v978_v41 = vadd.f32 %v970_v38, %v2452_v23  ;;  %v979_v43 = vadd.f32 %v971_v15, %v2457_v30  ;;  %v980_v45 = vadd.f32 %v972_v42, %v2460_v32 }
 0xc16   :  { %2189 = vtanh.f32 %v977_v40  ;;  %v1831_v51 = vmul.f32 -1.442695, %v977_v40  ;;  %v1832_v27 = vmul.f32 -1.442695, %v978_v41  ;;  %v1833_v36 = vmul.f32 -1.442695, %v979_v43 }
 0xc17   :  { %2191 = vtanh.f32 %v978_v41  ;;  %v1834_v11 = vmul.f32 -1.442695, %v980_v45 }
 0xc18   :  { %2193 = vtanh.f32 %v979_v43 }
 0xc19   :  { %2195 = vtanh.f32 %v980_v45 }
 0xc1a   :  { %2197 = vpow2.f32 %v1831_v51 }
 0xc1b   :  { %2199 = vpow2.f32 %v1832_v27 }
 0xc1c   :  { %2201 = vpow2.f32 %v1833_v36 }
 0xc1d   :  { %2203 = vpow2.f32 %v1834_v11 }
 0xc20   :  { %v2190_v46 = vpop.eup %2189 }
 0xc21   :  { %v2192_v47 = vpop.eup %2191  ;;  %1029 = vrot.lane.b32.xlu0 %v2190_v46, %s2348_s1 }
 0xc22   :  { %1031 = vrot.lane.b32.xlu1 %v2192_v47, %s2348_s1  ;;  %v2194_v48 = vpop.eup %2193 }
 0xc23   :  { %v2196_v49 = vpop.eup %2195 }
 0xc24   :  { %v2198_v54 = vpop.eup %2197 }
 0xc25   :  { %1033 = vrot.lane.b32.xlu0 %v2194_v48, %s2348_s1  ;;  %v2200_v35 = vpop.eup %2199  ;;  %v993_v55 = vadd.f32 1.0, %v2198_v54 }
 0xc26   :  { %1035 = vrot.lane.b32.xlu1 %v2196_v49, %s2348_s1  ;;  %v994_v56 = vadd.f32 1.0, %v2200_v35  ;;  %v2202_v57 = vpop.eup %2201 }
 0xc27   :  { %v2204_v58 = vpop.eup %2203  ;;  %2205 = vrcp.f32 %v993_v55  ;;  %v995_v59 = vadd.f32 1.0, %v2202_v57 }
 0xc28   :  { %2207 = vrcp.f32 %v994_v56  ;;  %v996_v61 = vadd.f32 1.0, %v2204_v58 }
 0xc29   :  { %2209 = vrcp.f32 %v995_v59 }
 0xc2a   :  { %2211 = vrcp.f32 %v996_v61 }
 0xc31   :  { %v2206_v62 = vpop.eup %2205 }
 0xc32   :  { %v2208_v2 = vpop.eup %2207  ;;  %v1021_v19 = vmul.f32 %v2206_v62, %v1013_v17 }
 0xc33   :  { %v2210_v50 = vpop.eup %2209  ;;  %v1022_v20 = vmul.f32 %v2208_v2, %v1014_v18 }
 0xc34   :  { %v2212_v13 = vpop.eup %2211  ;;  %v1023_v31 = vmul.f32 %v2210_v50, %v1015_v28 }
 0xc35   :  { %v1024_v60 = vmul.f32 %v2212_v13, %v1016_v29 }
 0xc93   :  { %v1030_v63 = vpop.permute.xlu0 %1029 }
 0xc94   :  { %v1032_v3 = vpop.permute.xlu1 %1031  ;;  %v1041_v7 = vmul.f32 %v2206_v62, %v1030_v63 }
 0xc95   :  { %v1042_v44 = vmul.f32 %v2208_v2, %v1032_v3 }
 0xc96   :  { %1049 = vrot.lane.b32.xlu0 %v1041_v7, %s2349_s2 }
 0xc97   :  { %1051 = vrot.lane.b32.xlu1 %v1042_v44, %s2349_s2  ;;  %v1034_v53 = vpop.permute.xlu0 %1033 }
 0xc98   :  { %v1036_v52 = vpop.permute.xlu1 %1035  ;;  %v1043_v14 = vmul.f32 %v2210_v50, %v1034_v53 }
 0xc99   :  { %v1044_v16 = vmul.f32 %v2212_v13, %v1036_v52 }
 0xc9a   :  { %1053 = vrot.lane.b32.xlu0 %v1043_v14, %s2349_s2 }
 0xc9b   :  { %1055 = vrot.lane.b32.xlu1 %v1044_v16, %s2349_s2 }
 0xd08   :  { %v1050_v21 = vpop.permute.xlu0 %1049 }
 0xd09   :  { %v1052_v22 = vpop.permute.xlu1 %1051  ;;  %v2642_v25 = vadd.f32 %v1050_v21, %v1021_v19 }
 0xd0a   :  { %v2644_v26 = vadd.f32 %v1052_v22, %v1022_v20 }
 0xd0b   :  { %2213 = vtanh.f32 %v2642_v25 }
 0xd0c   :  { %2215 = vtanh.f32 %v2644_v26  ;;  %v1054_v33 = vpop.permute.xlu0 %1053 }
 0xd0d   :  { %v1056_v5 = vpop.permute.xlu1 %1055  ;;  %v2650_v34 = vadd.f32 %v1054_v33, %v1023_v31 }
 0xd0e   :  { %v2652_v12 = vadd.f32 %v1056_v5, %v1024_v60 }
 0xd0f   :  { %2217 = vtanh.f32 %v2650_v34 }
 0xd10   :  { %2219 = vtanh.f32 %v2652_v12 }
 0xd15   :  { %v2214_v4 = vpop.eup %2213 }
 0xd16   :  { %v2216_v8 = vpop.eup %2215  ;;  %1073 = vrot.lane.b32.xlu0 %v2214_v4, %s2348_s1 }
 0xd17   :  { %1075 = vrot.lane.b32.xlu1 %v2216_v8, %s2348_s1 }
 0xd19   :  { %v2218_v9 = vpop.eup %2217 }
 0xd1a   :  { %v2220_v37 = vpop.eup %2219  ;;  %1077 = vrot.lane.b32.xlu0 %v2218_v9, %s2348_s1 }
 0xd1b   :  { %1079 = vrot.lane.b32.xlu1 %v2220_v37, %s2348_s1 }
 0xd88   :  { %v1074_v38 = vpop.permute.xlu0 %1073 }
 0xd89   :  { %v1076_v39 = vpop.permute.xlu1 %1075  ;;  %v1085_v40 = vmul.f32 %v2206_v62, %v1074_v38  ;;  %v1219_v38 = vrot.slane %v2642_v25, 7 }
 0xd8a   :  { %v1086_v15 = vmul.f32 %v2208_v2, %v1076_v39  ;;  %v1220_v39 = vrot.slane %v2644_v26, 7 }
 0xd8b   :  { %v1093_v42 = vrot.slane %v1085_v40, 4 }
 0xd8c   :  { %v1094_v41 = vrot.slane %v1086_v15, 3  ;;  %v1078_v43 = vpop.permute.xlu0 %1077 }
 0xd8d   :  { %v1080_v45 = vpop.permute.xlu1 %1079  ;;  %v1087_v46 = vmul.f32 %v2210_v50, %v1078_v43 }
 0xd8e   :  { %v1088_v47 = vmul.f32 %v2212_v13, %v1080_v45  ;;  %v1095_v49 = vsel %vm274_vm1, %v1094_v41, %v1093_v42 }
 0xd8f   :  { %v1096_v48 = vrot.slane %v1087_v46, 2  ;;  %v1221_v46 = vrot.slane %v2650_v34, 7 }
 0xd90   :  { %v1098_v51 = vrot.slane %v1088_v47, 1  ;;  %v1222_v47 = vrot.slane %v2652_v12, 7 }
 0xd91   :  { %v1097_v27 = vsel %vm277_vm2, %v1096_v48, %v1095_v49 }
 0xd92   :  { %v1099_v36 = vsel %vm280_vm3, %v1098_v51, %v1097_v27 }
 0xd93   :  { %1100 = vrot.lane.b32.xlu0 %v1099_v36, %s2349_s2 }
 0xe05   :  { %v1101_v11 = vpop.permute.xlu0 %1100 }
 0xe06   :  { %1961 = vmatmul.mubr.msk.f32.vlgmr.msra.gmra.mrb[4].mxu1 %vm87_vm4, %v1101_v11 }
 0xe07   :  { %2040 = vmatpush3.bf16.msra.mxu1 %v2412_v6  ;;  %1982 = vmatprep.mubr.msk.f32.mxu1 %vm2345_vm0, %v2346_v1 }
 0xe08   :  { %2041 = vmatprep.subr.bf16.mxu1 %v2344_v0 }
 0xe0b   :  { %2043 = vmatpush3.bf16.msra.mxu1 %v2424_v10 }
 0xed9   :  { %v1170_v54 = vpop.f32.mrb[4].mxu1 }
 0xeda   :  { %v1175_v35 = vrot.slane %v1170_v54, 3  ;;  %v1176_v55 = vrot.slane %v1170_v54, 4  ;;  %v1962_v56 = vpop.f32.mrb[5].mxu1  ;;  %v1177_v57 = vrot.slane %v1170_v54, 5  ;;  %v1178_v61 = vrot.slane %v1170_v54, 6 }
 0xedc   :  { %v1183_v58 = vadd.f32 %v1175_v35, %v2454_v24  ;;  %v1184_v59 = vadd.f32 %v1176_v55, %v2452_v23  ;;  %v1185_v6 = vadd.f32 %v1177_v57, %v2457_v30  ;;  %v1186_v62 = vadd.f32 %v1178_v61, %v2460_v32 }
 0xede   :  { %2221 = vtanh.f32 %v1183_v58  ;;  %v1836_v7 = vmul.f32 -1.442695, %v1183_v58  ;;  %v1837_v44 = vmul.f32 -1.442695, %v1184_v59  ;;  %v1838_v50 = vmul.f32 -1.442695, %v1185_v6 }
 0xedf   :  { %2223 = vtanh.f32 %v1184_v59  ;;  %v1839_v53 = vmul.f32 -1.442695, %v1186_v62 }
 0xee0   :  { %2225 = vtanh.f32 %v1185_v6 }
 0xee1   :  { %2227 = vtanh.f32 %v1186_v62 }
 0xee2   :  { %2229 = vpow2.f32 %v1836_v7 }
 0xee3   :  { %2231 = vpow2.f32 %v1837_v44 }
 0xee4   :  { %2233 = vpow2.f32 %v1838_v50 }
 0xee5   :  { %2235 = vpow2.f32 %v1839_v53 }
 0xee8   :  { %v2222_v63 = vpop.eup %2221 }
 0xee9   :  { %v2224_v10 = vpop.eup %2223  ;;  %1235 = vrot.lane.b32.xlu1 %v2222_v63, %s2348_s1 }
 0xeea   :  { %1237 = vrot.lane.b32.xlu0 %v2224_v10, %s2348_s1  ;;  %v2226_v2 = vpop.eup %2225 }
 0xeeb   :  { %v2228_v3 = vpop.eup %2227 }
 0xeec   :  { %v2230_v13 = vpop.eup %2229 }
 0xeed   :  { %1239 = vrot.lane.b32.xlu1 %v2226_v2, %s2348_s1  ;;  %v2232_v52 = vpop.eup %2231  ;;  %v1199_v14 = vadd.f32 1.0, %v2230_v13 }
 0xeee   :  { %1241 = vrot.lane.b32.xlu0 %v2228_v3, %s2348_s1  ;;  %v1200_v16 = vadd.f32 1.0, %v2232_v52  ;;  %v2234_v17 = vpop.eup %2233 }
 0xeef   :  { %v2236_v18 = vpop.eup %2235  ;;  %2237 = vrcp.f32 %v1199_v14  ;;  %v1201_v19 = vadd.f32 1.0, %v2234_v17 }
 0xef0   :  { %2239 = vrcp.f32 %v1200_v16  ;;  %v1202_v20 = vadd.f32 1.0, %v2236_v18 }
 0xef1   :  { %2241 = vrcp.f32 %v1201_v19 }
 0xef2   :  { %2243 = vrcp.f32 %v1202_v20 }
 0xef9   :  { %v2238_v21 = vpop.eup %2237 }
 0xefa   :  { %v2240_v28 = vpop.eup %2239  ;;  %v1227_v15 = vmul.f32 %v2238_v21, %v1219_v38 }
 0xefb   :  { %v2242_v33 = vpop.eup %2241  ;;  %v1228_v40 = vmul.f32 %v2240_v28, %v1220_v39 }
 0xefc   :  { %v2244_v4 = vpop.eup %2243  ;;  %v1229_v48 = vmul.f32 %v2242_v33, %v1221_v46 }
 0xefd   :  { %v1230_v25 = vmul.f32 %v2244_v4, %v1222_v47 }
 0xf5b   :  { %v1236_v22 = vpop.permute.xlu1 %1235 }
 0xf5c   :  { %v1238_v29 = vpop.permute.xlu0 %1237  ;;  %v1247_v31 = vmul.f32 %v2238_v21, %v1236_v22 }
 0xf5d   :  { %v1248_v60 = vmul.f32 %v2240_v28, %v1238_v29 }
 0xf5e   :  { %1255 = vrot.lane.b32.xlu1 %v1247_v31, %s2349_s2 }
 0xf5f   :  { %1257 = vrot.lane.b32.xlu0 %v1248_v60, %s2349_s2  ;;  %v1240_v5 = vpop.permute.xlu1 %1239 }
 0xf60   :  { %v1242_v8 = vpop.permute.xlu0 %1241  ;;  %v1249_v9 = vmul.f32 %v2242_v33, %v1240_v5 }
 0xf61   :  { %v1250_v37 = vmul.f32 %v2244_v4, %v1242_v8 }
 0xf62   :  { %1259 = vrot.lane.b32.xlu1 %v1249_v9, %s2349_s2 }
 0xf63   :  { %1261 = vrot.lane.b32.xlu0 %v1250_v37, %s2349_s2 }
 0xfd0   :  { %v1256_v41 = vpop.permute.xlu1 %1255 }
 0xfd1   :  { %v1258_v42 = vpop.permute.xlu0 %1257  ;;  %v2684_v43 = vadd.f32 %v1256_v41, %v1227_v15 }
 0xfd2   :  { %v2686_v45 = vadd.f32 %v1258_v42, %v1228_v40 }
 0xfd3   :  { %2245 = vtanh.f32 %v2684_v43 }
 0xfd4   :  { %2247 = vtanh.f32 %v2686_v45  ;;  %v1260_v49 = vpop.permute.xlu1 %1259 }
 0xfd5   :  { %v1262_v26 = vpop.permute.xlu0 %1261  ;;  %v2692_v51 = vadd.f32 %v1260_v49, %v1229_v48 }
 0xfd6   :  { %v2694_v27 = vadd.f32 %v1262_v26, %v1230_v25 }
 0xfd7   :  { %2249 = vtanh.f32 %v2692_v51 }
 0xfd8   :  { %2251 = vtanh.f32 %v2694_v27 }
 0xfdd   :  { %v2246_v36 = vpop.eup %2245 }
 0xfde   :  { %v2248_v34 = vpop.eup %2247  ;;  %1279 = vrot.lane.b32.xlu1 %v2246_v36, %s2348_s1 }
 0xfdf   :  { %1281 = vrot.lane.b32.xlu0 %v2248_v34, %s2348_s1 }
 0xfe1   :  { %v2250_v12 = vpop.eup %2249 }
 0xfe2   :  { %v2252_v11 = vpop.eup %2251  ;;  %1283 = vrot.lane.b32.xlu1 %v2250_v12, %s2348_s1 }
 0xfe3   :  { %1285 = vrot.lane.b32.xlu0 %v2252_v11, %s2348_s1  ;;  %v1425_v11 = vrot.slane %v2684_v43, 7 }
0x1050   :  { %v1280_v54 = vpop.permute.xlu1 %1279 }
0x1051   :  { %v1282_v35 = vpop.permute.xlu0 %1281  ;;  %v1291_v56 = vmul.f32 %v2238_v21, %v1280_v54  ;;  %v1426_v54 = vrot.slane %v2686_v45, 7 }
0x1052   :  { %v1292_v55 = vmul.f32 %v2240_v28, %v1282_v35 }
0x1053   :  { %v1299_v58 = vrot.slane %v1291_v56, 5 }
0x1054   :  { %v1300_v57 = vrot.slane %v1292_v55, 4  ;;  %v1284_v59 = vpop.permute.xlu1 %1283 }
0x1055   :  { %v1286_v61 = vpop.permute.xlu0 %1285  ;;  %v1293_v6 = vmul.f32 %v2242_v33, %v1284_v59 }
0x1056   :  { %v1294_v62 = vmul.f32 %v2244_v4, %v1286_v61  ;;  %v1301_v10 = vsel %vm274_vm1, %v1300_v57, %v1299_v58  ;;  %v1427_v61 = vrot.slane %v2692_v51, 7 }
0x1057   :  { %v1302_v63 = vrot.slane %v1293_v6, 3  ;;  %v1428_v6 = vrot.slane %v2694_v27, 7 }
0x1058   :  { %v1304_v2 = vrot.slane %v1294_v62, 2 }
0x1059   :  { %v1303_v3 = vsel %vm277_vm2, %v1302_v63, %v1301_v10 }
0x105a   :  { %v1305_v7 = vsel %vm280_vm3, %v1304_v2, %v1303_v3 }
0x105b   :  { %1306 = vrot.lane.b32.xlu1 %v1305_v7, %s2349_s2 }
0x10cd   :  { %v1307_v44 = vpop.permute.xlu1 %1306 }
0x10ce   :  { %1972 = vmatmul.mubr.msk.f32.vlgmr.msra.gmra.mrb[6].mxu0 %vm87_vm4, %v1307_v44 }
0x10cf   :  { %1993 = vmatprep.mubr.msk.f32.mxu0 %vm2345_vm0, %v2346_v1 }
0x11a1   :  { %v1376_v50 = vpop.f32.mrb[6].mxu0 }
0x11a2   :  { %v1381_v53 = vrot.slane %v1376_v50, 2  ;;  %v1382_v13 = vrot.slane %v1376_v50, 3  ;;  %v1973_v52 = vpop.f32.mrb[7].mxu0  ;;  %v1383_v14 = vrot.slane %v1376_v50, 4  ;;  %v1384_v18 = vrot.slane %v1376_v50, 5 }
0x11a4   :  { %v1389_v16 = vadd.f32 %v1381_v53, %v2454_v24  ;;  %v1390_v17 = vadd.f32 %v1382_v13, %v2452_v23  ;;  %v1391_v19 = vadd.f32 %v1383_v14, %v2457_v30  ;;  %v1392_v20 = vadd.f32 %v1384_v18, %v2460_v32 }
0x11a6   :  { %2253 = vtanh.f32 %v1389_v16  ;;  %v1841_v29 = vmul.f32 -1.442695, %v1389_v16  ;;  %v1842_v31 = vmul.f32 -1.442695, %v1390_v17  ;;  %v1843_v60 = vmul.f32 -1.442695, %v1391_v19 }
0x11a7   :  { %2255 = vtanh.f32 %v1390_v17  ;;  %v1844_v33 = vmul.f32 -1.442695, %v1392_v20 }
0x11a8   :  { %2257 = vtanh.f32 %v1391_v19 }
0x11a9   :  { %2259 = vtanh.f32 %v1392_v20 }
0x11aa   :  { %2261 = vpow2.f32 %v1841_v29 }
0x11ab   :  { %2263 = vpow2.f32 %v1842_v31 }
0x11ac   :  { %2265 = vpow2.f32 %v1843_v60 }
0x11ad   :  { %2267 = vpow2.f32 %v1844_v33 }
0x11b0   :  { %v2254_v21 = vpop.eup %2253 }
0x11b1   :  { %v2256_v1 = vpop.eup %2255  ;;  %1441 = vrot.lane.b32.xlu0 %v2254_v21, %s2348_s1 }
0x11b2   :  { %1443 = vrot.lane.b32.xlu1 %v2256_v1, %s2348_s1  ;;  %v2258_v22 = vpop.eup %2257 }
0x11b3   :  { %v2260_v28 = vpop.eup %2259 }
0x11b4   :  { %v2262_v5 = vpop.eup %2261 }
0x11b5   :  { %1445 = vrot.lane.b32.xlu0 %v2258_v22, %s2348_s1  ;;  %v2264_v4 = vpop.eup %2263  ;;  %v1405_v8 = vadd.f32 1.0, %v2262_v5 }
0x11b6   :  { %1447 = vrot.lane.b32.xlu1 %v2260_v28, %s2348_s1  ;;  %v1406_v9 = vadd.f32 1.0, %v2264_v4  ;;  %v2266_v37 = vpop.eup %2265 }
0x11b7   :  { %v2268_v38 = vpop.eup %2267  ;;  %2269 = vrcp.f32 %v1405_v8  ;;  %v1407_v39 = vadd.f32 1.0, %v2266_v37 }
0x11b8   :  { %2271 = vrcp.f32 %v1406_v9  ;;  %v1408_v15 = vadd.f32 1.0, %v2268_v38 }
0x11b9   :  { %2273 = vrcp.f32 %v1407_v39 }
0x11ba   :  { %2275 = vrcp.f32 %v1408_v15 }
0x11c1   :  { %v2270_v40 = vpop.eup %2269 }
0x11c2   :  { %v2272_v42 = vpop.eup %2271  ;;  %v1433_v35 = vmul.f32 %v2270_v40, %v1425_v11 }
0x11c3   :  { %v2274_v25 = vpop.eup %2273  ;;  %v1434_v55 = vmul.f32 %v2272_v42, %v1426_v54 }
0x11c4   :  { %v2276_v26 = vpop.eup %2275  ;;  %v1435_v62 = vmul.f32 %v2274_v25, %v1427_v61 }
0x11c5   :  { %v1436_v43 = vmul.f32 %v2276_v26, %v1428_v6 }
0x1223   :  { %v1442_v41 = vpop.permute.xlu0 %1441 }
0x1224   :  { %v1444_v46 = vpop.permute.xlu1 %1443  ;;  %v1453_v47 = vmul.f32 %v2270_v40, %v1442_v41 }
0x1225   :  { %v1454_v48 = vmul.f32 %v2272_v42, %v1444_v46 }
0x1226   :  { %1461 = vrot.lane.b32.xlu0 %v1453_v47, %s2349_s2 }
0x1227   :  { %1463 = vrot.lane.b32.xlu1 %v1454_v48, %s2349_s2  ;;  %v1446_v49 = vpop.permute.xlu0 %1445 }
0x1228   :  { %v1448_v36 = vpop.permute.xlu1 %1447  ;;  %v1455_v34 = vmul.f32 %v2274_v25, %v1446_v49 }
0x1229   :  { %v1456_v12 = vmul.f32 %v2276_v26, %v1448_v36 }
0x122a   :  { %1465 = vrot.lane.b32.xlu0 %v1455_v34, %s2349_s2 }
0x122b   :  { %1467 = vrot.lane.b32.xlu1 %v1456_v12, %s2349_s2 }
0x1298   :  { %v1462_v56 = vpop.permute.xlu0 %1461 }
0x1299   :  { %v1464_v57 = vpop.permute.xlu1 %1463  ;;  %v2723_v58 = vadd.f32 %v1462_v56, %v1433_v35 }
0x129a   :  { %v2725_v59 = vadd.f32 %v1464_v57, %v1434_v55 }
0x129b   :  { %2277 = vtanh.f32 %v2723_v58 }
0x129c   :  { %2279 = vtanh.f32 %v2725_v59  ;;  %v1466_v63 = vpop.permute.xlu0 %1465 }
0x129d   :  { %v1468_v45 = vpop.permute.xlu1 %1467  ;;  %v2731_v10 = vadd.f32 %v1466_v63, %v1435_v62 }
0x129e   :  { %v2733_v2 = vadd.f32 %v1468_v45, %v1436_v43  ;;  %v1631_v45 = vrot.slane %v2723_v58, 7 }
0x129f   :  { %2281 = vtanh.f32 %v2731_v10 }
0x12a0   :  { %2283 = vtanh.f32 %v2733_v2 }
0x12a5   :  { %v2278_v3 = vpop.eup %2277 }
0x12a6   :  { %v2280_v51 = vpop.eup %2279  ;;  %1485 = vrot.lane.b32.xlu0 %v2278_v3, %s2348_s1  ;;  %v1632_v3 = vrot.slane %v2725_v59, 7 }
0x12a7   :  { %1487 = vrot.lane.b32.xlu1 %v2280_v51, %s2348_s1 }
0x12a9   :  { %v2282_v27 = vpop.eup %2281 }
0x12aa   :  { %v2284_v7 = vpop.eup %2283  ;;  %1489 = vrot.lane.b32.xlu0 %v2282_v27, %s2348_s1 }
0x12ab   :  { %1491 = vrot.lane.b32.xlu1 %v2284_v7, %s2348_s1 }
0x1318   :  { %v1486_v44 = vpop.permute.xlu0 %1485 }
0x1319   :  { %v1488_v50 = vpop.permute.xlu1 %1487  ;;  %v1497_v13 = vmul.f32 %v2270_v40, %v1486_v44 }
0x131a   :  { %v1498_v53 = vmul.f32 %v2272_v42, %v1488_v50 }
0x131b   :  { %v1505_v14 = vrot.slane %v1497_v13, 6  ;;  %v1633_v13 = vrot.slane %v2731_v10, 7 }
0x131c   :  { %v1506_v52 = vrot.slane %v1498_v53, 5  ;;  %v1490_v16 = vpop.permute.xlu0 %1489 }
0x131d   :  { %v1492_v17 = vpop.permute.xlu1 %1491  ;;  %v1499_v18 = vmul.f32 %v2274_v25, %v1490_v16 }
0x131e   :  { %v1500_v19 = vmul.f32 %v2276_v26, %v1492_v17  ;;  %v1507_v21 = vsel %vm274_vm1, %v1506_v52, %v1505_v14  ;;  %v1634_v52 = vrot.slane %v2733_v2, 7 }
0x131f   :  { %v1508_v20 = vrot.slane %v1499_v18, 4 }
0x1320   :  { %v1510_v1 = vrot.slane %v1500_v19, 3 }
0x1321   :  { %v1509_v22 = vsel %vm277_vm2, %v1508_v20, %v1507_v21  ;;  %v1707_v20 = vld [vmem:[#allocation2] sm:$0xff]  ;;  %v1708_v21 = vld [vmem:[#allocation2 + $0x8] sm:$0xff] }
0x1322   :  { %v1511_v28 = vsel %vm280_vm3, %v1510_v1, %v1509_v22  ;;  %v1709_v1 = vld [vmem:[#allocation2 + $0x10] sm:$0xff]  ;;  %v2045_v10 = vpack.c.bf16 %v1708_v21, %v1707_v20 }
0x1323   :  { %1512 = vrot.lane.b32.xlu0 %v1511_v28, %s2349_s2  ;;  %v1710_v28 = vld [vmem:[#allocation2 + $0x18] sm:$0xff] }
0x1324   :  { %2046 = vmatpush3.bf16.msra.mxu0 %v2045_v10  ;;  %v2048_v2 = vpack.c.bf16 %v1710_v28, %v1709_v1 }
0x1325   :  { %2047 = vmatprep.subr.bf16.mxu0 %v2344_v0 }
0x1328   :  { %2049 = vmatpush3.bf16.msra.mxu0 %v2048_v2 }
0x1395   :  { %v1513_v29 = vpop.permute.xlu0 %1512 }
0x1396   :  { %1983 = vmatmul.mubr.msk.f32.vlgmr.msra.gmra.mrb[6].mxu1 %vm87_vm4, %v1513_v29 }
0x1469   :  { %v1582_v31 = vpop.f32.mrb[6].mxu1 }
0x146a   :  { %v1587_v60 = vrot.slane %v1582_v31, 1  ;;  %v1588_v33 = vrot.slane %v1582_v31, 2  ;;  %v1984_v5 = vpop.f32.mrb[7].mxu1  ;;  %v1589_v4 = vrot.slane %v1582_v31, 3  ;;  %v1590_v37 = vrot.slane %v1582_v31, 4 }
0x146c   :  { %v1595_v8 = vadd.f32 %v1587_v60, %v2454_v24  ;;  %v1596_v9 = vadd.f32 %v1588_v33, %v2452_v23  ;;  %v1597_v38 = vadd.f32 %v1589_v4, %v2457_v30  ;;  %v1598_v39 = vadd.f32 %v1590_v37, %v2460_v32 }
0x146e   :  { %2285 = vtanh.f32 %v1595_v8  ;;  %v1846_v23 = vmul.f32 -1.442695, %v1595_v8  ;;  %v1847_v24 = vmul.f32 -1.442695, %v1596_v9  ;;  %v1848_v30 = vmul.f32 -1.442695, %v1597_v38 }
0x146f   :  { %2287 = vtanh.f32 %v1596_v9  ;;  %v1849_v32 = vmul.f32 -1.442695, %v1598_v39 }
0x1470   :  { %2289 = vtanh.f32 %v1597_v38 }
0x1471   :  { %2291 = vtanh.f32 %v1598_v39 }
0x1472   :  { %2293 = vpow2.f32 %v1846_v23 }
0x1473   :  { %2295 = vpow2.f32 %v1847_v24 }
0x1474   :  { %2297 = vpow2.f32 %v1848_v30  ;;  %v1850_v30 = vld [vmem:[%s2783_s5] ss:$0 sm:$0xff] }
0x1475   :  { %2299 = vpow2.f32 %v1849_v32 }
0x1478   :  { %v2286_v15 = vpop.eup %2285 }
0x1479   :  { %v2288_v40 = vpop.eup %2287  ;;  %1647 = vrot.lane.b32.xlu1 %v2286_v15, %s2348_s1 }
0x147a   :  { %1649 = vrot.lane.b32.xlu0 %v2288_v40, %s2348_s1  ;;  %v2290_v41 = vpop.eup %2289 }
0x147b   :  { %v2292_v42 = vpop.eup %2291 }
0x147c   :  { %v2294_v46 = vpop.eup %2293 }
0x147d   :  { %1651 = vrot.lane.b32.xlu1 %v2290_v41, %s2348_s1  ;;  %v2296_v47 = vpop.eup %2295  ;;  %v1611_v48 = vadd.f32 1.0, %v2294_v46 }
0x147e   :  { %1653 = vrot.lane.b32.xlu0 %v2292_v42, %s2348_s1  ;;  %v1612_v25 = vadd.f32 1.0, %v2296_v47  ;;  %v2298_v49 = vpop.eup %2297 }
0x147f   :  { %v2300_v26 = vpop.eup %2299  ;;  %2301 = vrcp.f32 %v1611_v48  ;;  %v1613_v36 = vadd.f32 1.0, %v2298_v49 }
0x1480   :  { %2303 = vrcp.f32 %v1612_v25  ;;  %v1614_v34 = vadd.f32 1.0, %v2300_v26 }
0x1481   :  { %2305 = vrcp.f32 %v1613_v36 }
0x1482   :  { %2307 = vrcp.f32 %v1614_v34 }
0x1489   :  { %v2302_v12 = vpop.eup %2301 }
0x148a   :  { %v2304_v54 = vpop.eup %2303  ;;  %v1639_v51 = vmul.f32 %v2302_v12, %v1631_v45 }
0x148b   :  { %v2306_v57 = vpop.eup %2305  ;;  %v1640_v27 = vmul.f32 %v2304_v54, %v1632_v3 }
0x148c   :  { %v2308_v6 = vpop.eup %2307  ;;  %v1641_v14 = vmul.f32 %v2306_v57, %v1633_v13 }
0x148d   :  { %v1642_v16 = vmul.f32 %v2308_v6, %v1634_v52 }
0x14eb   :  { %v1648_v11 = vpop.permute.xlu1 %1647 }
0x14ec   :  { %v1650_v35 = vpop.permute.xlu0 %1649  ;;  %v1659_v55 = vmul.f32 %v2302_v12, %v1648_v11 }
0x14ed   :  { %v1660_v56 = vmul.f32 %v2304_v54, %v1650_v35 }
0x14ee   :  { %1667 = vrot.lane.b32.xlu1 %v1659_v55, %s2349_s2 }
0x14ef   :  { %1669 = vrot.lane.b32.xlu0 %v1660_v56, %s2349_s2  ;;  %v1652_v61 = vpop.permute.xlu1 %1651 }
0x14f0   :  { %v1654_v62 = vpop.permute.xlu0 %1653  ;;  %v1661_v43 = vmul.f32 %v2306_v57, %v1652_v61 }
0x14f1   :  { %v1662_v63 = vmul.f32 %v2308_v6, %v1654_v62 }
0x14f2   :  { %1671 = vrot.lane.b32.xlu1 %v1661_v43, %s2349_s2 }
0x14f3   :  { %1673 = vrot.lane.b32.xlu0 %v1662_v63, %s2349_s2 }
0x1560   :  { %v1668_v7 = vpop.permute.xlu1 %1667 }
0x1561   :  { %v1670_v44 = vpop.permute.xlu0 %1669  ;;  %v1679_v50 = vadd.f32 %v1668_v7, %v1639_v51 }
0x1562   :  { %v1680_v53 = vadd.f32 %v1670_v44, %v1640_v27 }
0x1563   :  { %2309 = vtanh.f32 %v1679_v50 }
0x1564   :  { %2311 = vtanh.f32 %v1680_v53  ;;  %v1672_v17 = vpop.permute.xlu1 %1671 }
0x1565   :  { %v1674_v18 = vpop.permute.xlu0 %1673  ;;  %v1681_v19 = vadd.f32 %v1672_v17, %v1641_v14 }
0x1566   :  { %v1682_v58 = vadd.f32 %v1674_v18, %v1642_v16 }
0x1567   :  { %2313 = vtanh.f32 %v1681_v19 }
0x1568   :  { %2315 = vtanh.f32 %v1682_v58 }
0x156d   :  { %v2310_v59 = vpop.eup %2309 }
0x156e   :  { %v2312_v22 = vpop.eup %2311  ;;  %1691 = vrot.lane.b32.xlu1 %v2310_v59, %s2348_s1 }
0x156f   :  { %1693 = vrot.lane.b32.xlu0 %v2312_v22, %s2348_s1 }
0x1571   :  { %v2314_v29 = vpop.eup %2313 }
0x1572   :  { %v2316_v31 = vpop.eup %2315  ;;  %1695 = vrot.lane.b32.xlu1 %v2314_v29, %s2348_s1 }
0x1573   :  { %1697 = vrot.lane.b32.xlu0 %v2316_v31, %s2348_s1 }
0x15e0   :  { %v1692_v60 = vpop.permute.xlu1 %1691 }
0x15e1   :  { %v1694_v33 = vpop.permute.xlu0 %1693  ;;  %v1703_v4 = vmul.f32 %v2302_v12, %v1692_v60 }
0x15e2   :  { %v1704_v5 = vmul.f32 %v2304_v54, %v1694_v33 }
0x15e3   :  { %v1722_v9 = vrot.slane %v1703_v4, 7 }
0x15e4   :  { %v1723_v8 = vrot.slane %v1704_v5, 6  ;;  %v1696_v37 = vpop.permute.xlu1 %1695 }
0x15e5   :  { %v1698_v38 = vpop.permute.xlu0 %1697  ;;  %v1705_v39 = vmul.f32 %v2306_v57, %v1696_v37 }
0x15e6   :  { %v1706_v15 = vmul.f32 %v2308_v6, %v1698_v38  ;;  %v1724_v0 = vsel %vm274_vm1, %v1723_v8, %v1722_v9 }
0x15e7   :  { %v1725_v40 = vrot.slane %v1705_v39, 5 }
0x15e8   :  { %v1727_v41 = vrot.slane %v1706_v15, 4 }
0x15e9   :  { %v1726_v42 = vsel %vm277_vm2, %v1725_v40, %v1724_v0 }
0x15ea   :  { %v1728_v23 = vsel %vm280_vm3, %v1727_v41, %v1726_v42 }
0x15eb   :  { %1729 = vrot.lane.b32.xlu1 %v1728_v23, %s2349_s2 }
0x165d   :  { %v1730_v24 = vpop.permute.xlu1 %1729 }
0x165e   :  { %1994 = vmatmul.mubr.msk.f32.vlgmr.msra.gmra.mrb[8].mxu0 %vm87_vm4, %v1730_v24 }
0x1731   :  { %v1799_v32 = vpop.f32.mrb[8].mxu0 }
0x1732   :  { %v1800_v46 = vadd.f32 %v1850_v30, %v1799_v32  ;;  %v1995_v47 = vpop.f32.mrb[9].mxu0 }
0x1734   :  { %1803 = vst [vmem:[%s2784_s6] sm:$0xf] %v1800_v46 }
0x1735   :  { %1808 = vsyncpa [#allocation3], 1 }

</bundles_post_ra>
